<compile_context>
chip_gen: v5e
topology: v5e:2x2
jax: 0.10.0
libtpu: 0.0.40
codegen_flags: <defaults>
</compile_context>

<pallas_src>
import jax
import jax.numpy as jnp
from jax.experimental import pallas as pl
from jax.experimental.pallas import tpu as pltpu

IN_DIM = 784          # 28 * 28 flattened MNIST image
HIDDEN = 128
LATENT = 32
BATCH = 256           # example batch in __main__ (grid of 2 steps -> both v7x TCs busy)


def autoencoder_kernel(x_ref,
                       w1_ref, b1_ref,   # encoder layer 1: 784 -> 128   (bf16 W, f32 b)
                       w2_ref, b2_ref,   # encoder layer 2: 128 -> 32
                       w3_ref, b3_ref,   # decoder layer 1: 32  -> 128
                       w4_ref, b4_ref,   # decoder layer 2: 128 -> 784
                       out_ref):
    # Cast activations to bf16 only at the MXU inputs; accumulate in f32.
    x = x_ref[...].astype(jnp.bfloat16)

    # ---- encoder ----
    h = jnp.dot(x, w1_ref[...], preferred_element_type=jnp.float32) + b1_ref[...]
    h = jnp.maximum(h, 0.0)                                            # ReLU (f32, VPU)
    z = jnp.dot(h.astype(jnp.bfloat16), w2_ref[...],
                preferred_element_type=jnp.float32) + b2_ref[...]

    # ---- decoder ----
    d = jnp.dot(z.astype(jnp.bfloat16), w3_ref[...],
                preferred_element_type=jnp.float32) + b3_ref[...]
    d = jnp.maximum(d, 0.0)                                            # ReLU (f32, VPU)
    recon = jnp.dot(d.astype(jnp.bfloat16), w4_ref[...],
                    preferred_element_type=jnp.float32) + b4_ref[...]

    out_ref[...] = recon.astype(out_ref.dtype)


def _choose_tm(n):
    """Target ~512 rows/step, but keep >=2 grid steps when possible (v7x: 2 TCs)."""
    half = ((n // 2) // 128) * 128
    return int(min(512, max(128, half)))


@jax.jit
def autoencoder_forward(x, kernel_params):
    """x: (N, 784) f32.  kernel_params: bf16 weights + f32 biases, (in, out) layout."""
    (w1, b1, w2, b2, w3, b3, w4, b4) = kernel_params
    n = x.shape[0]
    tm = _choose_tm(n)
    grid = (pl.cdiv(n, tm),)          # ragged final block handled by Pallas (no batch pad)
    resident = lambda i: (0, 0)       # weights/biases stay in VMEM across the grid

    out = pl.pallas_call(
        autoencoder_kernel,
        out_shape=jax.ShapeDtypeStruct((n, IN_DIM), jnp.float32),
        grid=grid,
        in_specs=[
            pl.BlockSpec((tm, IN_DIM), lambda i: (i, 0)),      # x tile
            pl.BlockSpec((IN_DIM, HIDDEN), resident),          # w1
            pl.BlockSpec((1, HIDDEN), resident),               # b1
            pl.BlockSpec((HIDDEN, LATENT), resident),          # w2
            pl.BlockSpec((1, LATENT), resident),               # b2
            pl.BlockSpec((LATENT, HIDDEN), resident),          # w3
            pl.BlockSpec((1, HIDDEN), resident),               # b3
            pl.BlockSpec((HIDDEN, IN_DIM), resident),          # w4
            pl.BlockSpec((1, IN_DIM), resident),               # b4
        ],
        out_specs=pl.BlockSpec((tm, IN_DIM), lambda i: (i, 0)),
        compiler_params=pltpu.CompilerParams(
            dimension_semantics=("parallel",),                 # shards batch across TCs on v7x
        ),
    )(x, w1, b1, w2, b2, w3, b3, w4, b4)

    return out


def init_params(key):
    """Deterministic Kaiming-ish f32 init; weights (in, out), biases (1, out)."""
    ks = jax.random.split(key, 4)

    def layer(k, fan_in, fan_out):
        w = jax.random.normal(k, (fan_in, fan_out), jnp.float32) * (1.0 / jnp.sqrt(fan_in))
        b = jnp.zeros((1, fan_out), jnp.float32)
        return w, b

    w1, b1 = layer(ks[0], IN_DIM, HIDDEN)
    w2, b2 = layer(ks[1], HIDDEN, LATENT)
    w3, b3 = layer(ks[2], LATENT, HIDDEN)
    w4, b4 = layer(ks[3], HIDDEN, IN_DIM)
    return (w1, b1, w2, b2, w3, b3, w4, b4)


def prepare_kernel_params(params_f32):
    """Cast weights to bf16 (biases stay f32)."""
    (w1, b1, w2, b2, w3, b3, w4, b4) = params_f32
    bf = jnp.bfloat16
    return (w1.astype(bf), b1,
            w2.astype(bf), b2,
            w3.astype(bf), b3,
            w4.astype(bf), b4)


def reference_forward(x, params_f32):
    """Pure-JAX reference with matching precision (bf16 matmul inputs, f32 acc)."""
    (w1, b1, w2, b2, w3, b3, w4, b4) = params_f32
    bf = jnp.bfloat16
    dot = lambda a, w: jnp.dot(a.astype(bf), w.astype(bf),
                               preferred_element_type=jnp.float32)
    h = jnp.maximum(dot(x, w1) + b1, 0.0)
    z = dot(h, w2) + b2
    d = jnp.maximum(dot(z, w3) + b3, 0.0)
    return dot(d, w4) + b4


if __name__ == "__main__":
    key = jax.random.PRNGKey(0)
    k_params, k_x = jax.random.split(key)

    params = init_params(k_params)
    kernel_params = prepare_kernel_params(params)

    # x: flattened images (batch, 28*28), as produced by images.view(N, -1)
    x = jax.random.normal(k_x, (BATCH, IN_DIM), jnp.float32)

    out = autoencoder_forward(x, kernel_params)
    out = jax.block_until_ready(out)

    ref = reference_forward(x, params)
    assert out.shape == (BATCH, IN_DIM)
    assert out.dtype == jnp.float32
    assert jnp.allclose(out, ref, atol=2e-3, rtol=2e-3), "mismatch vs reference"

    print("KERNEL_OK")
</pallas_src>

<mosaic_0001>
module attributes {stable_mosaic.version = 11 : i64} {
  func.func @autoencoder_kernel(%arg0: i32, %arg1: memref<128x784xf32, #tpu.memory_space<vmem>>, %arg2: memref<784x128xbf16, #tpu.memory_space<vmem>>, %arg3: memref<1x128xf32, #tpu.memory_space<vmem>>, %arg4: memref<128x32xbf16, #tpu.memory_space<vmem>>, %arg5: memref<1x32xf32, #tpu.memory_space<vmem>>, %arg6: memref<32x128xbf16, #tpu.memory_space<vmem>>, %arg7: memref<1x128xf32, #tpu.memory_space<vmem>>, %arg8: memref<128x784xbf16, #tpu.memory_space<vmem>>, %arg9: memref<1x784xf32, #tpu.memory_space<vmem>>, %arg10: memref<128x784xf32, #tpu.memory_space<vmem>>) attributes {dimension_semantics = [#tpu.dimension_semantics<parallel>], iteration_bounds = array<i64: 2>, scalar_prefetch = 0 : i64, scratch_operands = 0 : i64, tpu.core_type = #tpu.core_type<tc>, window_params = [{transform_indices = @transform_0, window_bounds = array<i64: 128, 784>}, {pipeline_mode = #tpu.pipeline_mode<synchronous>, transform_indices = @transform_1, window_bounds = array<i64: 784, 128>}, {pipeline_mode = #tpu.pipeline_mode<synchronous>, transform_indices = @transform_2, window_bounds = array<i64: 1, 128>}, {pipeline_mode = #tpu.pipeline_mode<synchronous>, transform_indices = @transform_3, window_bounds = array<i64: 128, 32>}, {pipeline_mode = #tpu.pipeline_mode<synchronous>, transform_indices = @transform_4, window_bounds = array<i64: 1, 32>}, {pipeline_mode = #tpu.pipeline_mode<synchronous>, transform_indices = @transform_5, window_bounds = array<i64: 32, 128>}, {pipeline_mode = #tpu.pipeline_mode<synchronous>, transform_indices = @transform_6, window_bounds = array<i64: 1, 128>}, {pipeline_mode = #tpu.pipeline_mode<synchronous>, transform_indices = @transform_7, window_bounds = array<i64: 128, 784>}, {pipeline_mode = #tpu.pipeline_mode<synchronous>, transform_indices = @transform_8, window_bounds = array<i64: 1, 784>}, {transform_indices = @transform_9, window_bounds = array<i64: 128, 784>}]} {
    %c0 = arith.constant 0 : index
    %c0_0 = arith.constant 0 : index
    %0 = vector.load %arg1[%c0, %c0_0] : memref<128x784xf32, #tpu.memory_space<vmem>>, vector<128x784xf32>
    %1 = arith.truncf %0 : vector<128x784xf32> to vector<128x784xbf16>
    %c0_1 = arith.constant 0 : index
    %c0_2 = arith.constant 0 : index
    %2 = vector.load %arg2[%c0_1, %c0_2] : memref<784x128xbf16, #tpu.memory_space<vmem>>, vector<784x128xbf16>
    %cst = arith.constant dense<0.000000e+00> : vector<128x128xf32>
    %3 = tpu.matmul %1, %2, %cst {dimension_numbers = #tpu.dot_dimension_numbers<[1], [0], [0], [1], [0, 0, 1, 1], [], []>} : vector<128x784xbf16>, vector<784x128xbf16>, vector<128x128xf32> -> vector<128x128xf32>
    %c0_3 = arith.constant 0 : index
    %c0_4 = arith.constant 0 : index
    %4 = vector.load %arg3[%c0_3, %c0_4] : memref<1x128xf32, #tpu.memory_space<vmem>>, vector<1x128xf32>
    %5 = vector.broadcast %4 : vector<1x128xf32> to vector<128x128xf32>
    %6 = arith.addf %3, %5 : vector<128x128xf32>
    %cst_5 = arith.constant 0.000000e+00 : f32
    %7 = vector.broadcast %cst_5 : f32 to vector<128x128xf32>
    %8 = arith.maximumf %6, %7 : vector<128x128xf32>
    %9 = arith.truncf %8 : vector<128x128xf32> to vector<128x128xbf16>
    %c0_6 = arith.constant 0 : index
    %c0_7 = arith.constant 0 : index
    %10 = vector.load %arg4[%c0_6, %c0_7] : memref<128x32xbf16, #tpu.memory_space<vmem>>, vector<128x32xbf16>
    %cst_8 = arith.constant dense<0.000000e+00> : vector<128x32xf32>
    %11 = tpu.matmul %9, %10, %cst_8 {dimension_numbers = #tpu.dot_dimension_numbers<[1], [0], [0], [1], [0, 0, 1, 1], [], []>} : vector<128x128xbf16>, vector<128x32xbf16>, vector<128x32xf32> -> vector<128x32xf32>
    %c0_9 = arith.constant 0 : index
    %c0_10 = arith.constant 0 : index
    %12 = vector.load %arg5[%c0_9, %c0_10] : memref<1x32xf32, #tpu.memory_space<vmem>>, vector<1x32xf32>
    %13 = vector.broadcast %12 : vector<1x32xf32> to vector<128x32xf32>
    %14 = arith.addf %11, %13 : vector<128x32xf32>
    %15 = arith.truncf %14 : vector<128x32xf32> to vector<128x32xbf16>
    %c0_11 = arith.constant 0 : index
    %c0_12 = arith.constant 0 : index
    %16 = vector.load %arg6[%c0_11, %c0_12] : memref<32x128xbf16, #tpu.memory_space<vmem>>, vector<32x128xbf16>
    %cst_13 = arith.constant dense<0.000000e+00> : vector<128x128xf32>
    %17 = tpu.matmul %15, %16, %cst_13 {dimension_numbers = #tpu.dot_dimension_numbers<[1], [0], [0], [1], [0, 0, 1, 1], [], []>} : vector<128x32xbf16>, vector<32x128xbf16>, vector<128x128xf32> -> vector<128x128xf32>
    %c0_14 = arith.constant 0 : index
    %c0_15 = arith.constant 0 : index
    %18 = vector.load %arg7[%c0_14, %c0_15] : memref<1x128xf32, #tpu.memory_space<vmem>>, vector<1x128xf32>
    %19 = vector.broadcast %18 : vector<1x128xf32> to vector<128x128xf32>
    %20 = arith.addf %17, %19 : vector<128x128xf32>
    %cst_16 = arith.constant 0.000000e+00 : f32
    %21 = vector.broadcast %cst_16 : f32 to vector<128x128xf32>
    %22 = arith.maximumf %20, %21 : vector<128x128xf32>
    %23 = arith.truncf %22 : vector<128x128xf32> to vector<128x128xbf16>
    %c0_17 = arith.constant 0 : index
    %c0_18 = arith.constant 0 : index
    %24 = vector.load %arg8[%c0_17, %c0_18] : memref<128x784xbf16, #tpu.memory_space<vmem>>, vector<128x784xbf16>
    %cst_19 = arith.constant dense<0.000000e+00> : vector<128x784xf32>
    %25 = tpu.matmul %23, %24, %cst_19 {dimension_numbers = #tpu.dot_dimension_numbers<[1], [0], [0], [1], [0, 0, 1, 1], [], []>} : vector<128x128xbf16>, vector<128x784xbf16>, vector<128x784xf32> -> vector<128x784xf32>
    %c0_20 = arith.constant 0 : index
    %c0_21 = arith.constant 0 : index
    %26 = vector.load %arg9[%c0_20, %c0_21] : memref<1x784xf32, #tpu.memory_space<vmem>>, vector<1x784xf32>
    %27 = vector.broadcast %26 : vector<1x784xf32> to vector<128x784xf32>
    %28 = arith.addf %25, %27 : vector<128x784xf32>
    %c0_22 = arith.constant 0 : index
    %c0_23 = arith.constant 0 : index
    %29 = vector.load %arg10[%c0_22, %c0_23] : memref<128x784xf32, #tpu.memory_space<vmem>>, vector<128x784xf32>
    tpu.vector_store %arg10[%c0_22, %c0_23], %28 {strides = array<i32>} : memref<128x784xf32, #tpu.memory_space<vmem>>, vector<128x784xf32>,
    return
  }
  func.func @transform_0(%arg0: i32) -> (i32, i32) {
    %c0_i32 = arith.constant 0 : i32
    %c0_i32_0 = arith.constant 0 : i32
    return %arg0, %c0_i32 : i32, i32
  }
  func.func @transform_1(%arg0: i32) -> (i32, i32) {
    %c0_i32 = arith.constant 0 : i32
    %c0_i32_0 = arith.constant 0 : i32
    %c0_i32_1 = arith.constant 0 : i32
    return %c0_i32, %c0_i32_0 : i32, i32
  }
  func.func @transform_2(%arg0: i32) -> (i32, i32) {
    %c0_i32 = arith.constant 0 : i32
    %c0_i32_0 = arith.constant 0 : i32
    %c0_i32_1 = arith.constant 0 : i32
    return %c0_i32, %c0_i32_0 : i32, i32
  }
  func.func @transform_3(%arg0: i32) -> (i32, i32) {
    %c0_i32 = arith.constant 0 : i32
    %c0_i32_0 = arith.constant 0 : i32
    %c0_i32_1 = arith.constant 0 : i32
    return %c0_i32, %c0_i32_0 : i32, i32
  }
  func.func @transform_4(%arg0: i32) -> (i32, i32) {
    %c0_i32 = arith.constant 0 : i32
    %c0_i32_0 = arith.constant 0 : i32
    %c0_i32_1 = arith.constant 0 : i32
    return %c0_i32, %c0_i32_0 : i32, i32
  }
  func.func @transform_5(%arg0: i32) -> (i32, i32) {
    %c0_i32 = arith.constant 0 : i32
    %c0_i32_0 = arith.constant 0 : i32
    %c0_i32_1 = arith.constant 0 : i32
    return %c0_i32, %c0_i32_0 : i32, i32
  }
  func.func @transform_6(%arg0: i32) -> (i32, i32) {
    %c0_i32 = arith.constant 0 : i32
    %c0_i32_0 = arith.constant 0 : i32
    %c0_i32_1 = arith.constant 0 : i32
    return %c0_i32, %c0_i32_0 : i32, i32
  }
  func.func @transform_7(%arg0: i32) -> (i32, i32) {
    %c0_i32 = arith.constant 0 : i32
    %c0_i32_0 = arith.constant 0 : i32
    %c0_i32_1 = arith.constant 0 : i32
    return %c0_i32, %c0_i32_0 : i32, i32
  }
  func.func @transform_8(%arg0: i32) -> (i32, i32) {
    %c0_i32 = arith.constant 0 : i32
    %c0_i32_0 = arith.constant 0 : i32
    %c0_i32_1 = arith.constant 0 : i32
    return %c0_i32, %c0_i32_0 : i32, i32
  }
  func.func @transform_9(%arg0: i32) -> (i32, i32) {
    %c0_i32 = arith.constant 0 : i32
    %c0_i32_0 = arith.constant 0 : i32
    return %arg0, %c0_i32 : i32, i32
  }
}

</mosaic_0001>

<bundles_post_ra>
// kernel: autoencoder_forward.1
= control target key start
LH: loop header
LB: loop body
LE: loop exit
PB: predicated region body
PF: predicated region fallthrough
CT: control target
= control target key end

     0   :  { %s3094_s30 = smov 0   ;;  %s4236_s0 = inlined_call_operand.vmem [shape: f32[256,784], index: 0, kind: input, shape index: {}]   ;;  %s4237_s1 = inlined_call_operand.vmem [shape: bf16[784,128], index: 1, kind: input, shape index: {}]   ;;  %s4238_s2 = inlined_call_operand.vmem [shape: f32[1,128], index: 2, kind: input, shape index: {}]   ;;  %s4239_s3 = inlined_call_operand.vmem [shape: bf16[128,32], index: 3, kind: input, shape index: {}]   ;;  %s4240_s4 = inlined_call_operand.vmem [shape: f32[1,32], index: 4, kind: input, shape index: {}]   ;;  %s4241_s5 = inlined_call_operand.vmem [shape: bf16[32,128], index: 5, kind: input, shape index: {}]   ;;  %s4242_s6 = inlined_call_operand.vmem [shape: f32[1,128], index: 6, kind: input, shape index: {}]   ;;  %s4243_s7 = inlined_call_operand.vmem [shape: bf16[128,784], index: 7, kind: input, shape index: {}]   ;;  %s4244_s8 = inlined_call_operand.vmem [shape: f32[1,784], index: 8, kind: input, shape index: {}]   ;;  %s4245_s9 = inlined_call_operand.vmem [shape: f32[256,784], index: 9, kind: output, shape index: {}]  }
   0x1 LB: > { %s2422_s10 = sadd.s32 4294967295, %s3042_s30   ;;  %p2426_p0 = scmp.ge.s32.totalorder %s3042_s30, 1  ;;  %s3042_s30 = sphi %s3094_s30, %s19_s30  }
   0x2   : > { %p289_p1 = scmp.lt.s32.totalorder %s3042_s30, 3 }
   0x4   : > { %p290_p2 = pnand %p2426_p0, %p289_p1 }
   0x5   : > { %s2427_s16 = sshll.u32 (!%p290_p2), %s2422_s10, 4 }
   0x6   : > { %293 = sbr.rel (%p290_p2) target bundleno = 987 (0x3db), region = 56  ;;  %p328_p3 = scmp.lt.s32.totalorder (!%p290_p2), %s2427_s16, 31 }
   0xb   : > { %v2916_v0 = vld [vmem:[%s4237_s1 + $0x38] sm:$0xff]  ;;  %v2915_v4 = vld [vmem:[%s4237_s1 + $0x30] sm:$0xff]  ;;  %v2914_v8 = vld [vmem:[%s4237_s1 + $0x28] sm:$0xff]  ;;  %s4247_s16 = smov (!%p328_p3, %s2427_s16), 31  ;;  %vm906_vm0 = vcmask 130048   ;;  %vm1443_vm1 = vcmask 261120  }
   0xc   : > { %v2924_v1 = vld [vmem:[%s4237_s1 + $0x78] sm:$0xff]  ;;  %931 = vmatpush.bf16.msra.mxu0 %v2916_v0  ;;  %v2923_v5 = vld [vmem:[%s4237_s1 + $0x70] sm:$0xff]  ;;  %v2922_v9 = vld [vmem:[%s4237_s1 + $0x68] sm:$0xff]  ;;  %s3024_s18 = smul.u32 56, %s4247_s16 }
   0xd   : > { %v2932_v2 = vld [vmem:[%s4237_s1 + $0xb8] sm:$0xff]  ;;  %980 = vmatpush.bf16.msra.mxu1 %v2924_v1  ;;  %v2931_v6 = vld [vmem:[%s4237_s1 + $0xb0] sm:$0xff]  ;;  %v2930_v10 = vld [vmem:[%s4237_s1 + $0xa8] sm:$0xff] }
   0xe   : > { %v2940_v3 = vld [vmem:[%s4237_s1 + $0xf8] sm:$0xff]  ;;  %1029 = vmatpush.bf16.msra.mxu2 %v2932_v2  ;;  %v2939_v7 = vld [vmem:[%s4237_s1 + $0xf0] sm:$0xff]  ;;  %v2938_v11 = vld [vmem:[%s4237_s1 + $0xe8] sm:$0xff]  ;;  %s3188_s28 = scalar_lea.vmem %s4236_s0, %s3024_s18  ;;  %s3952_s25 = scalar_lea.vmem %s4245_s9, %s3024_s18 }
   0xf   : > { %1078 = vmatpush.bf16.msra.mxu3 %v2940_v3  ;;  %v2913_v12 = vld [vmem:[%s4237_s1 + $0x20] sm:$0xff]  ;;  %v2912_v16 = vld [vmem:[%s4237_s1 + $0x18] sm:$0xff]  ;;  %v2911_v20 = vld [vmem:[%s4237_s1 + $0x10] sm:$0xff] }
  0x10   : > { %932 = vmatpush.bf16.msra.mxu0 %v2915_v4  ;;  %v2921_v13 = vld [vmem:[%s4237_s1 + $0x60] sm:$0xff]  ;;  %v2920_v17 = vld [vmem:[%s4237_s1 + $0x58] sm:$0xff]  ;;  %v2919_v21 = vld [vmem:[%s4237_s1 + $0x50] sm:$0xff] }
  0x11   : > { %981 = vmatpush.bf16.msra.mxu1 %v2923_v5  ;;  %v2929_v14 = vld [vmem:[%s4237_s1 + $0xa0] sm:$0xff]  ;;  %v2928_v18 = vld [vmem:[%s4237_s1 + $0x98] sm:$0xff]  ;;  %v2927_v22 = vld [vmem:[%s4237_s1 + $0x90] sm:$0xff] }
  0x12   : > { %1030 = vmatpush.bf16.msra.mxu2 %v2931_v6  ;;  %v2937_v15 = vld [vmem:[%s4237_s1 + $0xe0] sm:$0xff]  ;;  %v2936_v19 = vld [vmem:[%s4237_s1 + $0xd8] sm:$0xff]  ;;  %v2935_v23 = vld [vmem:[%s4237_s1 + $0xd0] sm:$0xff] }
  0x13   : > { %1079 = vmatpush.bf16.msra.mxu3 %v2939_v7  ;;  %v2910_v24 = vld [vmem:[%s4237_s1 + $0x8] sm:$0xff]  ;;  %v2909_v28 = vld [vmem:[%s4237_s1] sm:$0xff]  ;;  %v349_v33 = vld [vmem:[%s3188_s28 + $0x38] sm:$0xff] }
  0x14   : > { %933 = vmatpush.bf16.msra.mxu0 %v2914_v8  ;;  %v2918_v25 = vld [vmem:[%s4237_s1 + $0x48] sm:$0xff]  ;;  %v2917_v29 = vld [vmem:[%s4237_s1 + $0x40] sm:$0xff]  ;;  %v344_v36 = vld [vmem:[%s3188_s28 + $0x10] sm:$0xff] }
  0x15   : > { %982 = vmatpush.bf16.msra.mxu1 %v2922_v9  ;;  %v2926_v26 = vld [vmem:[%s4237_s1 + $0x88] sm:$0xff]  ;;  %v2925_v30 = vld [vmem:[%s4237_s1 + $0x80] sm:$0xff]  ;;  %v345_v38 = vld [vmem:[%s3188_s28 + $0x18] sm:$0xff] }
  0x16   : > { %1031 = vmatpush.bf16.msra.mxu2 %v2930_v10  ;;  %v2934_v27 = vld [vmem:[%s4237_s1 + $0xc8] sm:$0xff]  ;;  %v2933_v31 = vld [vmem:[%s4237_s1 + $0xc0] sm:$0xff]  ;;  %v352_v39 = vld [vmem:[%s3188_s28 + $0x50] sm:$0xff] }
  0x17   : > { %1080 = vmatpush.bf16.msra.mxu3 %v2938_v11  ;;  %v342_v32 = vld [vmem:[%s3188_s28] sm:$0xff]  ;;  %v343_v34 = vld [vmem:[%s3188_s28 + $0x8] sm:$0xff]  ;;  %v2948_v41 = vld [vmem:[%s4237_s1 + $0x138] sm:$0xff]  ;;  %v457_v45 = vpack.c.bf16 %v352_v39, %v345_v38 }
  0x18   : > { %934 = vmatpush.bf16.msra.mxu0 %v2913_v12  ;;  %v350_v35 = vld [vmem:[%s3188_s28 + $0x40] sm:$0xff]  ;;  %v351_v37 = vld [vmem:[%s3188_s28 + $0x48] sm:$0xff]  ;;  %v454_v42 = vpack.c.bf16 %v349_v33, %v342_v32  ;;  %v2956_v46 = vld [vmem:[%s4237_s1 + $0x178] sm:$0xff] }
  0x19   : > { %983 = vmatpush.bf16.msra.mxu1 %v2921_v13  ;;  %v2957_v40 = vld [vmem:[%s4237_s1 + $0x180] sm:$0xff]  ;;  %v455_v43 = vpack.c.bf16 %v350_v35, %v343_v34  ;;  %v456_v44 = vpack.c.bf16 %v351_v37, %v344_v36  ;;  %v2947_v47 = vld [vmem:[%s4237_s1 + $0x130] sm:$0xff]  ;;  %v2946_v49 = vld [vmem:[%s4237_s1 + $0x128] sm:$0xff] }
  0x1a   : > { %1032 = vmatpush.bf16.msra.mxu2 %v2929_v14  ;;  %v2955_v48 = vld [vmem:[%s4237_s1 + $0x170] sm:$0xff]  ;;  %v2954_v50 = vld [vmem:[%s4237_s1 + $0x168] sm:$0xff]  ;;  %v357_v53 = vld [vmem:[%s3188_s28 + $0x78] sm:$0xff] }
  0x1b   : > { %1081 = vmatpush.bf16.msra.mxu3 %v2937_v15  ;;  %v356_v51 = vld [vmem:[%s3188_s28 + $0x70] sm:$0xff]  ;;  %v363_v52 = vld [vmem:[%s3188_s28 + $0xa8] sm:$0xff]  ;;  %v358_v55 = vld [vmem:[%s3188_s28 + $0x80] sm:$0xff] }
  0x1c   : > { %935 = vmatpush.bf16.msra.mxu0 %v2912_v16  ;;  %v364_v54 = vld [vmem:[%s3188_s28 + $0xb0] sm:$0xff]  ;;  %v365_v56 = vld [vmem:[%s3188_s28 + $0xb8] sm:$0xff]  ;;  %v359_v57 = vld [vmem:[%s3188_s28 + $0x88] sm:$0xff]  ;;  %v461_v59 = vpack.c.bf16 %v363_v52, %v356_v51 }
  0x1d   : > { %984 = vmatpush.bf16.msra.mxu1 %v2920_v17  ;;  %v366_v58 = vld [vmem:[%s3188_s28 + $0xc0] sm:$0xff]  ;;  %v462_v60 = vpack.c.bf16 %v364_v54, %v357_v53  ;;  %v463_v61 = vpack.c.bf16 %v365_v56, %v358_v55  ;;  %v377_v2 = vld [vmem:[%s3188_s28 + $0x118] sm:$0xff]  ;;  %v371_v3 = vld [vmem:[%s3188_s28 + $0xe8] sm:$0xff] }
  0x1e   : > { %1033 = vmatpush.bf16.msra.mxu2 %v2928_v18  ;;  %v464_v62 = vpack.c.bf16 %v366_v58, %v359_v57  ;;  %v2945_v63 = vld [vmem:[%s4237_s1 + $0x120] sm:$0xff]  ;;  %v372_v5 = vld [vmem:[%s3188_s28 + $0xf0] sm:$0xff]  ;;  %v379_v6 = vld [vmem:[%s3188_s28 + $0x128] sm:$0xff] }
  0x1f   : > { %1082 = vmatpush.bf16.msra.mxu3 %v2936_v19  ;;  %v2953_v0 = vld [vmem:[%s4237_s1 + $0x160] sm:$0xff]  ;;  %v373_v7 = vld [vmem:[%s3188_s28 + $0xf8] sm:$0xff]  ;;  %v380_v8 = vld [vmem:[%s3188_s28 + $0x130] sm:$0xff]  ;;  %v470_v11 = vpack.c.bf16 %v379_v6, %v372_v5 }
  0x20   : > { %936 = vmatpush.bf16.msra.mxu0 %v2911_v20  ;;  %v370_v1 = vld [vmem:[%s3188_s28 + $0xe0] sm:$0xff]  ;;  %v471_v12 = vpack.c.bf16 %v380_v8, %v373_v7  ;;  %v2944_v13 = vld [vmem:[%s4237_s1 + $0x118] sm:$0xff]  ;;  %v384_v15 = vld [vmem:[%s3188_s28 + $0x150] sm:$0xff] }
  0x21   : > { %985 = vmatpush.bf16.msra.mxu1 %v2919_v21  ;;  %v378_v4 = vld [vmem:[%s3188_s28 + $0x120] sm:$0xff]  ;;  %v468_v9 = vpack.c.bf16 %v377_v2, %v370_v1  ;;  %v2952_v14 = vld [vmem:[%s4237_s1 + $0x158] sm:$0xff]  ;;  %v391_v16 = vld [vmem:[%s3188_s28 + $0x188] sm:$0xff] }
  0x22   : > { %1034 = vmatpush.bf16.msra.mxu2 %v2927_v22  ;;  %v469_v10 = vpack.c.bf16 %v378_v4, %v371_v3  ;;  %v385_v17 = vld [vmem:[%s3188_s28 + $0x158] sm:$0xff]  ;;  %v392_v18 = vld [vmem:[%s3188_s28 + $0x190] sm:$0xff]  ;;  %v386_v19 = vld [vmem:[%s3188_s28 + $0x160] sm:$0xff] }
  0x23   : > { %1083 = vmatpush.bf16.msra.mxu3 %v2935_v23  ;;  %v393_v20 = vld [vmem:[%s3188_s28 + $0x198] sm:$0xff]  ;;  %v387_v21 = vld [vmem:[%s3188_s28 + $0x168] sm:$0xff]  ;;  %v394_v22 = vld [vmem:[%s3188_s28 + $0x1a0] sm:$0xff]  ;;  %v475_v23 = vpack.c.bf16 %v391_v16, %v384_v15 }
  0x24   : > { %937 = vmatpush.bf16.msra.mxu0 %v2910_v24  ;;  %v476_v24 = vpack.c.bf16 %v392_v18, %v385_v17  ;;  %v406_v32 = vld [vmem:[%s3188_s28 + $0x200] sm:$0xff]  ;;  %v400_v33 = vld [vmem:[%s3188_s28 + $0x1d0] sm:$0xff]  ;;  %v407_v34 = vld [vmem:[%s3188_s28 + $0x208] sm:$0xff] }
  0x25   : > { %986 = vmatpush.bf16.msra.mxu1 %v2918_v25  ;;  %v477_v25 = vpack.c.bf16 %v393_v20, %v386_v19  ;;  %v401_v35 = vld [vmem:[%s3188_s28 + $0x1d8] sm:$0xff]  ;;  %v408_v36 = vld [vmem:[%s3188_s28 + $0x210] sm:$0xff]  ;;  %v484_v39 = vpack.c.bf16 %v407_v34, %v400_v33  ;;  %v2941_v55 = vld [vmem:[%s4237_s1 + $0x100] sm:$0xff] }
  0x26   : > { %1035 = vmatpush.bf16.msra.mxu2 %v2926_v26  ;;  %v478_v26 = vpack.c.bf16 %v394_v22, %v387_v21  ;;  %v2949_v56 = vld [vmem:[%s4237_s1 + $0x140] sm:$0xff]  ;;  %v433_v58 = vld [vmem:[%s3188_s28 + $0x2d8] sm:$0xff]  ;;  %v440_v5 = vld [vmem:[%s3188_s28 + $0x310] sm:$0xff] }
  0x27   : > { %1084 = vmatpush.bf16.msra.mxu3 %v2934_v27  ;;  %v2943_v27 = vld [vmem:[%s4237_s1 + $0x110] sm:$0xff]  ;;  %v426_v57 = vld [vmem:[%s3188_s28 + $0x2a0] sm:$0xff]  ;;  %v447_v6 = vld [vmem:[%s3188_s28 + $0x348] sm:$0xff] }
  0x28   : > { %938 = vmatpush.bf16.msra.mxu0 %v2909_v28  ;;  %v2951_v28 = vld [vmem:[%s4237_s1 + $0x150] sm:$0xff]  ;;  %v496_v1 = vpack.c.bf16 %v433_v58, %v426_v57  ;;  %v441_v7 = vld [vmem:[%s3188_s28 + $0x318] sm:$0xff]  ;;  %v346_v18 = vld [vmem:[%s3188_s28 + $0x20] sm:$0xff] }
  0x29   : > { %987 = vmatpush.bf16.msra.mxu1 %v2917_v29  ;;  %v398_v29 = vld [vmem:[%s3188_s28 + $0x1c0] sm:$0xff]  ;;  %v448_v8 = vld [vmem:[%s3188_s28 + $0x350] sm:$0xff]  ;;  %v2965_v17 = vld [vmem:[%s4239_s3 + $0x38] sm:$0xff] }
  0x2a   : > { %1036 = vmatpush.bf16.msra.mxu2 %v2925_v30  ;;  %v405_v30 = vld [vmem:[%s3188_s28 + $0x1f8] sm:$0xff]  ;;  %v347_v20 = vld [vmem:[%s3188_s28 + $0x28] sm:$0xff]  ;;  %v354_v21 = vld [vmem:[%s3188_s28 + $0x60] sm:$0xff] }
  0x2b   : > { %1085 = vmatpush.bf16.msra.mxu3 %v2933_v31  ;;  %939 = vmatmul.bf16.vlgmr.msra.gmra.mxu0 %v454_v42  ;;  %v399_v31 = vld [vmem:[%s3188_s28 + $0x1c8] sm:$0xff]  ;;  %v482_v37 = vpack.c.bf16 %v405_v30, %v398_v29  ;;  %v353_v19 = vld [vmem:[%s3188_s28 + $0x58] sm:$0xff]  ;;  %v3333_v22 = vld [vmem:[%s4238_s2] ss:$0 sm:$0xff] }
  0x2c   : > { %1127 = vmatpush.bf16.msrb.mxu0 %v2948_v41  ;;  %988 = vmatmul.bf16.vlgmr.msra.gmra.mxu1 %v455_v43  ;;  %v483_v38 = vpack.c.bf16 %v406_v32, %v399_v31  ;;  %v2942_v41 = vld [vmem:[%s4237_s1 + $0x108] sm:$0xff]  ;;  %v412_v43 = vld [vmem:[%s3188_s28 + $0x230] sm:$0xff] }
  0x2d   : > { %1037 = vmatmul.bf16.vlgmr.msra.gmra.mxu2 %v456_v44  ;;  %1176 = vmatpush.bf16.msrb.mxu1 %v2956_v46  ;;  %v2950_v42 = vld [vmem:[%s4237_s1 + $0x148] sm:$0xff]  ;;  %v420_v46 = vld [vmem:[%s3188_s28 + $0x270] sm:$0xff] }
  0x2e   : > { %1232 = vmatpush.bf16.msrb.mxu2 %v2957_v40  ;;  %1086 = vmatmul.bf16.vlgmr.msra.gmra.mxu3 %v457_v45  ;;  %v485_v40 = vpack.c.bf16 %v408_v36, %v401_v35  ;;  %v419_v44 = vld [vmem:[%s3188_s28 + $0x268] sm:$0xff]  ;;  %v413_v45 = vld [vmem:[%s3188_s28 + $0x238] sm:$0xff]  ;;  %v2964_v32 = vld [vmem:[%s4239_s3 + $0x30] sm:$0xff] }
  0x2f   : > { %v489_v51 = vpack.c.bf16 %v419_v44, %v412_v43  ;;  %v490_v52 = vpack.c.bf16 %v420_v46, %v413_v45  ;;  %1366 = vmatpush.bf16.msrb.mxu3 %v2965_v17  ;;  %v362_v43 = vld [vmem:[%s3188_s28 + $0xa0] sm:$0xff]  ;;  %v369_v44 = vld [vmem:[%s3188_s28 + $0xd8] sm:$0xff] }
  0x30   : > { %1128 = vmatpush.bf16.msrb.mxu0 %v2947_v47  ;;  %v414_v47 = vld [vmem:[%s3188_s28 + $0x240] sm:$0xff] }
  0x31   : > { %1177 = vmatpush.bf16.msrb.mxu1 %v2955_v48  ;;  %v421_v48 = vld [vmem:[%s3188_s28 + $0x278] sm:$0xff] }
  0x32   : > { %v491_v53 = vpack.c.bf16 %v421_v48, %v414_v47 }
  0x33   : > { %1367 = vmatpush.bf16.msrb.mxu3 %v2964_v32 }
  0x34   : > { %1129 = vmatpush.bf16.msrb.mxu0 %v2946_v49  ;;  %v415_v49 = vld [vmem:[%s3188_s28 + $0x248] sm:$0xff] }
  0x35   : > { %1178 = vmatpush.bf16.msrb.mxu1 %v2954_v50  ;;  %v422_v50 = vld [vmem:[%s3188_s28 + $0x280] sm:$0xff] }
  0x36   : > { %v492_v54 = vpack.c.bf16 %v422_v50, %v415_v49 }
  0x38   : > { %1130 = vmatpush.bf16.msrb.mxu0 %v2945_v63  ;;  %v429_v63 = vld [vmem:[%s3188_s28 + $0x2b8] sm:$0xff] }
  0x39   : > { %1179 = vmatpush.bf16.msrb.mxu1 %v2953_v0  ;;  %v436_v0 = vld [vmem:[%s3188_s28 + $0x2f0] sm:$0xff] }
  0x3a   : > { %v499_v4 = vpack.c.bf16 %v436_v0, %v429_v63  ;;  %v375_v63 = vld [vmem:[%s3188_s28 + $0x108] sm:$0xff]  ;;  %v382_v0 = vld [vmem:[%s3188_s28 + $0x140] sm:$0xff] }
  0x3b   : > { %944 = vmatmul.bf16.gmra.mxu0 %v461_v59  ;;  %v427_v59 = vld [vmem:[%s3188_s28 + $0x2a8] sm:$0xff] }
  0x3c   : > { %993 = vmatmul.bf16.gmra.mxu1 %v462_v60  ;;  %1131 = vmatpush.bf16.msrb.mxu0 %v2944_v13  ;;  %v434_v60 = vld [vmem:[%s3188_s28 + $0x2e0] sm:$0xff]  ;;  %v503_v13 = vpack.c.bf16 %v447_v6, %v440_v5  ;;  %v473_v5 = vpack.c.bf16 %v382_v0, %v375_v63 }
  0x3d   : > { %1042 = vmatmul.bf16.gmra.mxu2 %v463_v61  ;;  %1180 = vmatpush.bf16.msrb.mxu1 %v2952_v14  ;;  %v428_v61 = vld [vmem:[%s3188_s28 + $0x2b0] sm:$0xff]  ;;  %v497_v2 = vpack.c.bf16 %v434_v60, %v427_v59  ;;  %v504_v14 = vpack.c.bf16 %v448_v8, %v441_v7 }
  0x3e   : > { %1091 = vmatmul.bf16.gmra.mxu3 %v464_v62  ;;  %v435_v62 = vld [vmem:[%s3188_s28 + $0x2e8] sm:$0xff] }
  0x3f   : > { %v498_v3 = vpack.c.bf16 %v435_v62, %v428_v61  ;;  %v374_v61 = vld [vmem:[%s3188_s28 + $0x100] sm:$0xff]  ;;  %v381_v62 = vld [vmem:[%s3188_s28 + $0x138] sm:$0xff] }
  0x40   : > { %1132 = vmatpush.bf16.msrb.mxu0 %v2943_v27 }
  0x41   : > { %1181 = vmatpush.bf16.msrb.mxu1 %v2951_v28 }
  0x44   : > { %1133 = vmatpush.bf16.msrb.mxu0 %v2942_v41  ;;  %v361_v41 = vld [vmem:[%s3188_s28 + $0x98] sm:$0xff] }
  0x45   : > { %1182 = vmatpush.bf16.msrb.mxu1 %v2950_v42  ;;  %v368_v42 = vld [vmem:[%s3188_s28 + $0xd0] sm:$0xff] }
  0x46   : > { %v466_v47 = vpack.c.bf16 %v368_v42, %v361_v41 }
  0x48   : > { %1134 = vmatpush.bf16.msrb.mxu0 %v2941_v55 }
  0x49   : > { %1183 = vmatpush.bf16.msrb.mxu1 %v2949_v56 }
  0x4b   : > { %949 = vmatmul.bf16.gmra.mxu0 %v468_v9  ;;  %v442_v9 = vld [vmem:[%s3188_s28 + $0x320] sm:$0xff] }
  0x4c   : > { %998 = vmatmul.bf16.gmra.mxu1 %v469_v10  ;;  %v449_v10 = vld [vmem:[%s3188_s28 + $0x358] sm:$0xff] }
  0x4d   : > { %1047 = vmatmul.bf16.gmra.mxu2 %v470_v11  ;;  %v443_v11 = vld [vmem:[%s3188_s28 + $0x328] sm:$0xff]  ;;  %v505_v15 = vpack.c.bf16 %v449_v10, %v442_v9 }
  0x4e   : > { %1096 = vmatmul.bf16.gmra.mxu3 %v471_v12  ;;  %v450_v12 = vld [vmem:[%s3188_s28 + $0x360] sm:$0xff] }
  0x4f   : > { %v506_v16 = vpack.c.bf16 %v450_v12, %v443_v11  ;;  %v2962_v12 = vld [vmem:[%s4239_s3 + $0x20] sm:$0xff] }
  0x5b   : > { %954 = vmatmul.bf16.gmra.mxu0 %v475_v23  ;;  %v348_v23 = vld [vmem:[%s3188_s28 + $0x30] sm:$0xff] }
  0x5c   : > { %1003 = vmatmul.bf16.gmra.mxu1 %v476_v24  ;;  %v355_v24 = vld [vmem:[%s3188_s28 + $0x68] sm:$0xff] }
  0x5d   : > { %1052 = vmatmul.bf16.gmra.mxu2 %v477_v25  ;;  %v458_v25 = vpack.c.bf16 %v353_v19, %v346_v18  ;;  %v460_v29 = vpack.c.bf16 %v355_v24, %v348_v23  ;;  %v388_v19 = vld [vmem:[%s3188_s28 + $0x170] sm:$0xff]  ;;  %v390_v24 = vld [vmem:[%s3188_s28 + $0x180] sm:$0xff] }
  0x5e   : > { %1101 = vmatmul.bf16.gmra.mxu3 %v478_v26  ;;  %v459_v26 = vpack.c.bf16 %v354_v21, %v347_v20  ;;  %v395_v20 = vld [vmem:[%s3188_s28 + $0x1a8] sm:$0xff]  ;;  %v389_v21 = vld [vmem:[%s3188_s28 + $0x178] sm:$0xff]  ;;  %v396_v23 = vld [vmem:[%s3188_s28 + $0x1b0] sm:$0xff] }
  0x6b   : > { %959 = vmatmul.bf16.gmra.mxu0 %v482_v37 }
  0x6c   : > { %1008 = vmatmul.bf16.gmra.mxu1 %v483_v38 }
  0x6d   : > { %1057 = vmatmul.bf16.gmra.mxu2 %v484_v39  ;;  %v360_v39 = vld [vmem:[%s3188_s28 + $0x90] sm:$0xff] }
  0x6e   : > { %1106 = vmatmul.bf16.gmra.mxu3 %v485_v40  ;;  %v367_v40 = vld [vmem:[%s3188_s28 + $0xc8] sm:$0xff] }
  0x6f   : > { %v465_v46 = vpack.c.bf16 %v367_v40, %v360_v39 }
  0x7b   : > { %964 = vmatmul.bf16.gmra.mxu0 %v489_v51  ;;  %v467_v51 = vpack.c.bf16 %v369_v44, %v362_v43  ;;  %v402_v43 = vld [vmem:[%s3188_s28 + $0x1e0] sm:$0xff]  ;;  %v409_v44 = vld [vmem:[%s3188_s28 + $0x218] sm:$0xff] }
  0x7c   : > { %1013 = vmatmul.bf16.gmra.mxu1 %v490_v52 }
  0x7d   : > { %1062 = vmatmul.bf16.gmra.mxu2 %v491_v53 }
  0x7e   : > { %1111 = vmatmul.bf16.gmra.mxu3 %v492_v54  ;;  %v2963_v54 = vld [vmem:[%s4239_s3 + $0x28] sm:$0xff] }
  0x7f   : > { %1368 = vmatpush.bf16.msrb.mxu3 %v2963_v54 }
  0x83   : > { %1369 = vmatpush.bf16.msrb.mxu3 %v2962_v12 }
  0x8b   : > { %969 = vmatmul.bf16.gmra.mxu0 %v496_v1  ;;  %v376_v1 = vld [vmem:[%s3188_s28 + $0x110] sm:$0xff] }
  0x8c   : > { %1018 = vmatmul.bf16.gmra.mxu1 %v497_v2  ;;  %v383_v2 = vld [vmem:[%s3188_s28 + $0x148] sm:$0xff] }
  0x8d   : > { %1067 = vmatmul.bf16.gmra.mxu2 %v498_v3  ;;  %v474_v9 = vpack.c.bf16 %v383_v2, %v376_v1  ;;  %v416_v1 = vld [vmem:[%s3188_s28 + $0x250] sm:$0xff]  ;;  %v423_v2 = vld [vmem:[%s3188_s28 + $0x288] sm:$0xff] }
  0x8e   : > { %1116 = vmatmul.bf16.gmra.mxu3 %v499_v4  ;;  %v472_v4 = vpack.c.bf16 %v381_v62, %v374_v61 }
  0x9b   : > { %974 = vmatmul.bf16.gmra.mxu0 %v503_v13 }
  0x9c   : > { %1023 = vmatmul.bf16.gmra.mxu1 %v504_v14 }
  0x9d   : > { %1072 = vmatmul.bf16.gmra.mxu2 %v505_v15 }
  0x9e   : > { %1121 = vmatmul.bf16.gmra.mxu3 %v506_v16 }
  0xa8   : > { %v940_v27 = vpop.f32.mrf.mxu0 }
  0xa9   : > { %v989_v28 = vpop.f32.mrf.mxu1  ;;  %v941_v30 = vadd.f32 %v3333_v22, %v940_v27  ;;  %v479_v27 = vpack.c.bf16 %v395_v20, %v388_v19 }
  0xab   : > { %v990_v31 = vadd.f32 %v989_v28, %v941_v30  ;;  %1135 = vmatmul.bf16.vlgmr.msrb.gmra.mxu0 %v458_v25  ;;  %v397_v25 = vld [vmem:[%s3188_s28 + $0x1b8] sm:$0xff]  ;;  %v480_v28 = vpack.c.bf16 %v396_v23, %v389_v21  ;;  %v430_v23 = vld [vmem:[%s3188_s28 + $0x2c0] sm:$0xff] }
  0xac   : > { %1184 = vmatmul.bf16.vlgmr.msrb.gmra.mxu1 %v459_v26  ;;  %v481_v32 = vpack.c.bf16 %v397_v25, %v390_v24  ;;  %v437_v24 = vld [vmem:[%s3188_s28 + $0x2f8] sm:$0xff]  ;;  %v431_v25 = vld [vmem:[%s3188_s28 + $0x2c8] sm:$0xff] }
  0xad   : > { %2627 = vmatmul.msk.bf16.vlgmr.msrb.gmra.mxu2 %vm906_vm0, %v460_v29 }
  0xb0   : > { %v1038_v33 = vpop.f32.mrf.mxu2  ;;  %v942_v35 = vpop.f32.mrf.mxu0 }
  0xb1   : > { %v3342_v34 = vadd.f32 %v1038_v33, %v990_v31  ;;  %v991_v36 = vpop.f32.mrf.mxu1  ;;  %v943_v37 = vadd.f32 %v3333_v22, %v942_v35 }
  0xb3   : > { %v992_v38 = vadd.f32 %v991_v36, %v943_v37  ;;  %v2961_v36 = vld [vmem:[%s4239_s3 + $0x18] sm:$0xff] }
  0xb4   : > { %1370 = vmatpush.bf16.msrb.mxu3 %v2961_v36 }
  0xb8   : > { %v1040_v45 = vpop.f32.mrf.mxu2  ;;  %v945_v49 = vpop.f32.mrf.mxu0 }
  0xb9   : > { %v3351_v48 = vadd.f32 %v1040_v45, %v992_v38  ;;  %v994_v50 = vpop.f32.mrf.mxu1  ;;  %v946_v52 = vadd.f32 %v3333_v22, %v945_v49  ;;  %v403_v45 = vld [vmem:[%s3188_s28 + $0x1e8] sm:$0xff] }
  0xba   : > { %v411_v49 = vld [vmem:[%s3188_s28 + $0x228] sm:$0xff] }
  0xbb   : > { %v995_v53 = vadd.f32 %v994_v50, %v946_v52  ;;  %1140 = vmatmul.bf16.gmra.mxu0 %v465_v46  ;;  %v410_v46 = vld [vmem:[%s3188_s28 + $0x220] sm:$0xff] }
  0xbc   : > { %1189 = vmatmul.bf16.gmra.mxu1 %v466_v47  ;;  %v404_v47 = vld [vmem:[%s3188_s28 + $0x1f0] sm:$0xff]  ;;  %v487_v52 = vpack.c.bf16 %v410_v46, %v403_v45 }
  0xbd   : > { %2628 = vmatmul.msk.bf16.gmra.mxu2 %vm906_vm0, %v467_v51  ;;  %v486_v51 = vpack.c.bf16 %v409_v44, %v402_v43 }
  0xc0   : > { %v1043_v55 = vpop.f32.mrf.mxu2  ;;  %v947_v57 = vpop.f32.mrf.mxu0 }
  0xc1   : > { %v3358_v56 = vadd.f32 %v1043_v55, %v995_v53  ;;  %v996_v58 = vpop.f32.mrf.mxu1  ;;  %v948_v59 = vadd.f32 %v3333_v22, %v947_v57  ;;  %v488_v57 = vpack.c.bf16 %v411_v49, %v404_v47  ;;  %v444_v47 = vld [vmem:[%s3188_s28 + $0x330] sm:$0xff]  ;;  %v451_v49 = vld [vmem:[%s3188_s28 + $0x368] sm:$0xff] }
  0xc3   : > { %v997_v60 = vadd.f32 %v996_v58, %v948_v59 }
  0xc8   : > { %v1045_v3 = vpop.f32.mrf.mxu2  ;;  %v950_v7 = vpop.f32.mrf.mxu0 }
  0xc9   : > { %v3367_v6 = vadd.f32 %v1045_v3, %v997_v60  ;;  %v999_v8 = vpop.f32.mrf.mxu1  ;;  %v951_v10 = vadd.f32 %v3333_v22, %v950_v7  ;;  %v2960_v60 = vld [vmem:[%s4239_s3 + $0x10] sm:$0xff]  ;;  %v417_v3 = vld [vmem:[%s3188_s28 + $0x258] sm:$0xff] }
  0xca   : > { %1371 = vmatpush.bf16.msrb.mxu3 %v2960_v60  ;;  %v425_v7 = vld [vmem:[%s3188_s28 + $0x298] sm:$0xff] }
  0xcb   : > { %v1000_v11 = vadd.f32 %v999_v8, %v951_v10  ;;  %1145 = vmatmul.bf16.gmra.mxu0 %v472_v4  ;;  %v424_v4 = vld [vmem:[%s3188_s28 + $0x290] sm:$0xff] }
  0xcc   : > { %1194 = vmatmul.bf16.gmra.mxu1 %v473_v5  ;;  %v418_v5 = vld [vmem:[%s3188_s28 + $0x260] sm:$0xff]  ;;  %v494_v10 = vpack.c.bf16 %v424_v4, %v417_v3 }
  0xcd   : > { %2629 = vmatmul.msk.bf16.gmra.mxu2 %vm906_vm0, %v474_v9  ;;  %v493_v9 = vpack.c.bf16 %v423_v2, %v416_v1 }
  0xd0   : > { %v1048_v13 = vpop.f32.mrf.mxu2  ;;  %v952_v15 = vpop.f32.mrf.mxu0 }
  0xd1   : > { %v3374_v14 = vadd.f32 %v1048_v13, %v1000_v11  ;;  %v1001_v16 = vpop.f32.mrf.mxu1  ;;  %v953_v17 = vadd.f32 %v3333_v22, %v952_v15  ;;  %v495_v13 = vpack.c.bf16 %v425_v7, %v418_v5 }
  0xd3   : > { %v1002_v18 = vadd.f32 %v1001_v16, %v953_v17  ;;  %v2959_v17 = vld [vmem:[%s4239_s3 + $0x8] sm:$0xff] }
  0xd4   : > { %1372 = vmatpush.bf16.msrb.mxu3 %v2959_v17 }
  0xd8   : > { %v1050_v26 = vpop.f32.mrf.mxu2  ;;  %v955_v30 = vpop.f32.mrf.mxu0 }
  0xd9   : > { %v3383_v29 = vadd.f32 %v1050_v26, %v1002_v18  ;;  %v1004_v31 = vpop.f32.mrf.mxu1  ;;  %v956_v33 = vadd.f32 %v3333_v22, %v955_v30  ;;  %v438_v26 = vld [vmem:[%s3188_s28 + $0x300] sm:$0xff]  ;;  %v1087_v30 = vpop.f32.mrf.mxu3 }
  0xdb   : > { %v1005_v35 = vadd.f32 %v1004_v31, %v956_v33  ;;  %1150 = vmatmul.bf16.gmra.mxu0 %v479_v27  ;;  %v432_v27 = vld [vmem:[%s3188_s28 + $0x2d0] sm:$0xff]  ;;  %v501_v33 = vpack.c.bf16 %v438_v26, %v431_v25 }
  0xdc   : > { %1199 = vmatmul.bf16.gmra.mxu1 %v480_v28  ;;  %v439_v28 = vld [vmem:[%s3188_s28 + $0x308] sm:$0xff] }
  0xdd   : > { %2630 = vmatmul.msk.bf16.gmra.mxu2 %vm906_vm0, %v481_v32  ;;  %v500_v32 = vpack.c.bf16 %v437_v24, %v430_v23 }
  0xe0   : > { %v1053_v37 = vpop.f32.mrf.mxu2  ;;  %v957_v39 = vpop.f32.mrf.mxu0 }
  0xe1   : > { %v3390_v38 = vadd.f32 %v1053_v37, %v1005_v35  ;;  %v1006_v40 = vpop.f32.mrf.mxu1  ;;  %v958_v41 = vadd.f32 %v3333_v22, %v957_v39  ;;  %v502_v37 = vpack.c.bf16 %v439_v28, %v432_v27  ;;  %v1089_v46 = vpop.f32.mrf.mxu3 }
  0xe2   : > { %v1090_v23 = vadd.f32 %v1089_v46, %v3351_v48 }
  0xe3   : > { %v1007_v42 = vadd.f32 %v1006_v40, %v958_v41  ;;  %v2958_v41 = vld [vmem:[%s4239_s3] sm:$0xff] }
  0xe4   : > { %1373 = vmatpush.bf16.msrb.mxu3 %v2958_v41 }
  0xe8   : > { %v1055_v50 = vpop.f32.mrf.mxu2  ;;  %v960_v54 = vpop.f32.mrf.mxu0 }
  0xe9   : > { %v3399_v53 = vadd.f32 %v1055_v50, %v1007_v42  ;;  %v1009_v55 = vpop.f32.mrf.mxu1  ;;  %v961_v58 = vadd.f32 %v3333_v22, %v960_v54  ;;  %v445_v50 = vld [vmem:[%s3188_s28 + $0x338] sm:$0xff]  ;;  %v1092_v2 = vpop.f32.mrf.mxu3 }
  0xea   : > { %v453_v54 = vld [vmem:[%s3188_s28 + $0x378] sm:$0xff] }
  0xeb   : > { %v1010_v59 = vadd.f32 %v1009_v55, %v961_v58  ;;  %1155 = vmatmul.bf16.gmra.mxu0 %v486_v51  ;;  %v452_v51 = vld [vmem:[%s3188_s28 + $0x370] sm:$0xff] }
  0xec   : > { %1204 = vmatmul.bf16.gmra.mxu1 %v487_v52  ;;  %v446_v52 = vld [vmem:[%s3188_s28 + $0x340] sm:$0xff]  ;;  %v508_v58 = vpack.c.bf16 %v452_v51, %v445_v50 }
  0xed   : > { %2631 = vmatmul.msk.bf16.gmra.mxu2 %vm906_vm0, %v488_v57  ;;  %v507_v57 = vpack.c.bf16 %v451_v49, %v444_v47 }
  0xf0   : > { %v1058_v61 = vpop.f32.mrf.mxu2  ;;  %v3408_v63 = vpop.f32.mrf.mxu0 }
  0xf1   : > { %v3406_v62 = vadd.f32 %v1058_v61, %v1010_v59  ;;  %v3410_v0 = vpop.f32.mrf.mxu1  ;;  %v509_v61 = vpack.c.bf16 %v453_v54, %v446_v52 }
  0xf8   : > { %v3418_v8 = vpop.f32.mrf.mxu2  ;;  %v965_v11 = vpop.f32.mrf.mxu0 }
  0xf9   : > { %v1014_v12 = vpop.f32.mrf.mxu1  ;;  %v966_v15 = vadd.f32 %v3333_v22, %v965_v11 }
  0xfb   : > { %v1015_v16 = vadd.f32 %v1014_v12, %v966_v15  ;;  %1160 = vmatmul.bf16.gmra.mxu0 %v493_v9  ;;  %v1088_v15 = vadd.f32 %v1087_v30, %v3342_v34 }
  0xfc   : > { %1209 = vmatmul.bf16.gmra.mxu1 %v494_v10  ;;  %v1094_v10 = vpop.f32.mrf.mxu3 }
  0xfd   : > { %2632 = vmatmul.msk.bf16.gmra.mxu2 %vm906_vm0, %v495_v13  ;;  %v1095_v46 = vadd.f32 %v1094_v10, %v3367_v6 }
 0x100   : > { %v1063_v18 = vpop.f32.mrf.mxu2  ;;  %v3427_v20 = vpop.f32.mrf.mxu0 }
 0x101   : > { %v3425_v19 = vadd.f32 %v1063_v18, %v1015_v16  ;;  %v3429_v21 = vpop.f32.mrf.mxu1  ;;  %v2967_v16 = vld [vmem:[%s4241_s5 + $0x8] sm:$0xff] }
 0x102   : > { %1474 = vmatpush.bf16.msra.mxu0 %v2967_v16 }
 0x104   : > { %v1097_v17 = vpop.f32.mrf.mxu3 }
 0x108   : > { %v3437_v31 = vpop.f32.mrf.mxu2  ;;  %v970_v35 = vpop.f32.mrf.mxu0 }
 0x109   : > { %v1019_v36 = vpop.f32.mrf.mxu1  ;;  %v971_v39 = vadd.f32 %v3333_v22, %v970_v35 }
 0x10b   : > { %v1020_v40 = vadd.f32 %v1019_v36, %v971_v39  ;;  %1165 = vmatmul.bf16.gmra.mxu0 %v500_v32 }
 0x10c   : > { %1214 = vmatmul.bf16.gmra.mxu1 %v501_v33  ;;  %v1099_v30 = vpop.f32.mrf.mxu3 }
 0x10d   : > { %2633 = vmatmul.msk.bf16.gmra.mxu2 %vm906_vm0, %v502_v37  ;;  %v1100_v10 = vadd.f32 %v1099_v30, %v3383_v29 }
 0x110   : > { %v1068_v42 = vpop.f32.mrf.mxu2  ;;  %v3446_v44 = vpop.f32.mrf.mxu0 }
 0x111   : > { %v3444_v43 = vadd.f32 %v1068_v42, %v1020_v40  ;;  %v3448_v45 = vpop.f32.mrf.mxu1  ;;  %v1093_v42 = vadd.f32 %v1092_v2, %v3358_v56  ;;  %v1098_v2 = vadd.f32 %v1097_v17, %v3374_v14 }
 0x114   : > { %v1102_v52 = vpop.f32.mrf.mxu3 }
 0x115   : > { %v1103_v14 = vadd.f32 %v1102_v52, %v3390_v38 }
 0x118   : > { %v3456_v55 = vpop.f32.mrf.mxu2  ;;  %v975_v59 = vpop.f32.mrf.mxu0 }
 0x119   : > { %v1024_v60 = vpop.f32.mrf.mxu1  ;;  %v976_v1 = vadd.f32 %v3333_v22, %v975_v59 }
 0x11b   : > { %v1025_v3 = vadd.f32 %v1024_v60, %v976_v1  ;;  %1170 = vmatmul.bf16.gmra.mxu0 %v507_v57 }
 0x11c   : > { %1219 = vmatmul.bf16.gmra.mxu1 %v508_v58  ;;  %v1104_v56 = vpop.f32.mrf.mxu3 }
 0x11d   : > { %2634 = vmatmul.msk.bf16.gmra.mxu2 %vm906_vm0, %v509_v61  ;;  %v1105_v29 = vadd.f32 %v1104_v56, %v3399_v53 }
 0x120   : > { %v1073_v4 = vpop.f32.mrf.mxu2  ;;  %v3462_v7 = vpop.f32.mrf.mxu0 }
 0x121   : > { %v3460_v5 = vadd.f32 %v1073_v4, %v1025_v3  ;;  %v3464_v9 = vpop.f32.mrf.mxu1 }
 0x128   : > { %v3466_v11 = vpop.f32.mrf.mxu2  ;;  %v1136_v12 = vpop.f32.mrf.mxu0 }
 0x129   : > { %v1185_v13 = vpop.f32.mrf.mxu1  ;;  %v1137_v24 = vadd.f32 %v1136_v12, %v1088_v15 }
 0x12b   : > { %v1186_v28 = vadd.f32 %v1185_v13, %v1137_v24 }
 0x130   : > { %v1234_v18 = vpop.f32.mrf.mxu2  ;;  %v1138_v25 = vpop.f32.mrf.mxu0 }
 0x131   : > { %v1187_v26 = vpop.f32.mrf.mxu1  ;;  %v1139_v27 = vadd.f32 %v1138_v25, %v1090_v23  ;;  %v1235_v32 = vadd.f32 %v1234_v18, %v1186_v28 }
 0x133   : > { %v1188_v33 = vadd.f32 %v1187_v26, %v1139_v27  ;;  %v1274_v39 = vmax.f32 %v1235_v32, 0.0  ;;  %v1107_v26 = vpop.f32.mrf.mxu3 }
 0x138   : > { %v1236_v35 = vpop.f32.mrf.mxu2  ;;  %v1141_v37 = vpop.f32.mrf.mxu0 }
 0x139   : > { %v1237_v36 = vadd.f32 %v1236_v35, %v1188_v33  ;;  %v1190_v34 = vpop.f32.mrf.mxu1  ;;  %v1142_v47 = vadd.f32 %v1141_v37, %v1093_v42 }
 0x13b   : > { %v1275_v40 = vmax.f32 %v1237_v36, 0.0  ;;  %v1191_v54 = vadd.f32 %v1190_v34, %v1142_v47 }
 0x13d   : > { %v1290_v41 = vpack.c.bf16 %v1275_v40, %v1274_v39  ;;  %v1109_v40 = vpop.f32.mrf.mxu3 }
 0x13f   : > { %1374 = vmatmul.bf16.vlgmr.msrb.gmra.mxu3 %v1290_v41 }
 0x140   : > { %v1239_v48 = vpop.f32.mrf.mxu2  ;;  %v1143_v49 = vpop.f32.mrf.mxu0 }
 0x141   : > { %v1192_v50 = vpop.f32.mrf.mxu1  ;;  %v1144_v51 = vadd.f32 %v1143_v49, %v1095_v46  ;;  %v1240_v57 = vadd.f32 %v1239_v48, %v1191_v54  ;;  %v963_v48 = vadd.f32 %v3333_v22, %v3408_v63  ;;  %v2966_v63 = vld [vmem:[%s4241_s5] sm:$0xff] }
 0x142   : > { %1475 = vmatpush.bf16.msra.mxu0 %v2966_v63 }
 0x143   : > { %v1193_v58 = vadd.f32 %v1192_v50, %v1144_v51  ;;  %v1276_v3 = vmax.f32 %v1240_v57, 0.0  ;;  %v1012_v38 = vadd.f32 %v3410_v0, %v963_v48 }
 0x145   : > { %v1112_v53 = vpop.f32.mrf.mxu3 }
 0x148   : > { %v1241_v59 = vpop.f32.mrf.mxu2  ;;  %v1146_v61 = vpop.f32.mrf.mxu0 }
 0x149   : > { %v1242_v60 = vadd.f32 %v1241_v59, %v1193_v58  ;;  %v1195_v1 = vpop.f32.mrf.mxu1  ;;  %v1147_v13 = vadd.f32 %v1146_v61, %v1098_v2  ;;  %v1061_v58 = vadd.f32 %v3418_v8, %v1012_v38  ;;  %v968_v8 = vadd.f32 %v3333_v22, %v3427_v20 }
 0x14b   : > { %v1277_v4 = vmax.f32 %v1242_v60, 0.0  ;;  %v1196_v23 = vadd.f32 %v1195_v1, %v1147_v13  ;;  %v1108_v60 = vadd.f32 %v1107_v26, %v3406_v62  ;;  %v1110_v1 = vadd.f32 %v1109_v40, %v1061_v58 }
 0x14d   : > { %v1291_v12 = vpack.c.bf16 %v1277_v4, %v1276_v3  ;;  %v1114_v2 = vpop.f32.mrf.mxu3 }
 0x14f   : > { %1379 = vmatmul.bf16.gmra.mxu3 %v1291_v12 }
 0x150   : > { %v1244_v6 = vpop.f32.mrf.mxu2  ;;  %v1148_v15 = vpop.f32.mrf.mxu0 }
 0x151   : > { %v1197_v16 = vpop.f32.mrf.mxu1  ;;  %v1149_v18 = vadd.f32 %v1148_v15, %v1100_v10  ;;  %v1245_v24 = vadd.f32 %v1244_v6, %v1196_v23 }
 0x153   : > { %v1198_v25 = vadd.f32 %v1197_v16, %v1149_v18  ;;  %v1278_v35 = vmax.f32 %v1245_v24, 0.0  ;;  %v1017_v18 = vadd.f32 %v3429_v21, %v968_v8 }
 0x158   : > { %v1246_v27 = vpop.f32.mrf.mxu2  ;;  %v1151_v32 = vpop.f32.mrf.mxu0 }
 0x159   : > { %v1247_v28 = vadd.f32 %v1246_v27, %v1198_v25  ;;  %v1200_v33 = vpop.f32.mrf.mxu1  ;;  %v1152_v34 = vadd.f32 %v1151_v32, %v1103_v14  ;;  %v1066_v25 = vadd.f32 %v3437_v31, %v1017_v18  ;;  %v1113_v27 = vadd.f32 %v1112_v53, %v3425_v19 }
 0x15a   : > { %v978_v53 = vadd.f32 %v3333_v22, %v3462_v7 }
 0x15b   : > { %v1279_v36 = vmax.f32 %v1247_v28, 0.0  ;;  %v1201_v42 = vadd.f32 %v1200_v33, %v1152_v34  ;;  %v1117_v28 = vpop.f32.mrf.mxu3  ;;  %v1115_v33 = vadd.f32 %v1114_v2, %v1066_v25 }
 0x15c   : > { %v1027_v63 = vadd.f32 %v3464_v9, %v978_v53  ;;  %v3006_v53 = vld [vmem:[%s4243_s7 + $0x130] sm:$0xf0] }
 0x15d   : > { %v1292_v37 = vpack.c.bf16 %v1279_v36, %v1278_v35 }
 0x15f   : > { %1384 = vmatmul.bf16.gmra.mxu3 %v1292_v37 }
 0x160   : > { %v1249_v17 = vpop.f32.mrf.mxu2  ;;  %v1153_v30 = vpop.f32.mrf.mxu0 }
 0x161   : > { %v1202_v39 = vpop.f32.mrf.mxu1  ;;  %v1154_v41 = vadd.f32 %v1153_v30, %v1105_v29  ;;  %v1250_v46 = vadd.f32 %v1249_v17, %v1201_v42  ;;  %v973_v17 = vadd.f32 %v3333_v22, %v3446_v44 }
 0x163   : > { %v1203_v47 = vadd.f32 %v1202_v39, %v1154_v41  ;;  %v1280_v52 = vmax.f32 %v1250_v46, 0.0  ;;  %v1119_v40 = vpop.f32.mrf.mxu3  ;;  %v1022_v19 = vadd.f32 %v3448_v45, %v973_v17 }
 0x165   : > { %v1071_v48 = vadd.f32 %v3456_v55, %v1022_v19  ;;  %v3013_v19 = vld [vmem:[%s4243_s7 + $0x168] sm:$0xf0] }
 0x168   : > { %v1251_v49 = vpop.f32.mrf.mxu2  ;;  %v1156_v51 = vpop.f32.mrf.mxu0 }
 0x169   : > { %v1252_v50 = vadd.f32 %v1251_v49, %v1203_v47  ;;  %v1205_v54 = vpop.f32.mrf.mxu1  ;;  %v1157_v3 = vadd.f32 %v1156_v51, %v1108_v60  ;;  %v1118_v47 = vadd.f32 %v1117_v28, %v3444_v43  ;;  %v2881_v28 = vld [vmem:[%s4243_s7 + $0x188] sm:$0xf] }
 0x16b   : > { %v1281_v57 = vmax.f32 %v1252_v50, 0.0  ;;  %v1206_v56 = vadd.f32 %v1205_v54, %v1157_v3  ;;  %v1120_v50 = vadd.f32 %v1119_v40, %v1071_v48  ;;  %v1076_v3 = vadd.f32 %v3466_v11, %v1027_v63  ;;  %v2883_v11 = vld [vmem:[%s4243_s7 + $0x1a4] sm:$0xf0]  ;;  %v2853_v40 = vld [vmem:[%s4243_s7 + $0x150] sm:$0xf] }
 0x16d   : > { %v1293_v59 = vpack.c.bf16 %v1281_v57, %v1280_v52  ;;  %v1122_v52 = vpop.f32.mrf.mxu3 }
 0x16f   : > { %1389 = vmatmul.bf16.gmra.mxu3 %v1293_v59 }
 0x170   : > { %v1254_v61 = vpop.f32.mrf.mxu2  ;;  %v1158_v4 = vpop.f32.mrf.mxu0 }
 0x171   : > { %v1207_v12 = vpop.f32.mrf.mxu1  ;;  %v1159_v0 = vadd.f32 %v1158_v4, %v1110_v1  ;;  %v1255_v6 = vadd.f32 %v1254_v61, %v1206_v56 }
 0x173   : > { %v1208_v10 = vadd.f32 %v1207_v12, %v1159_v0  ;;  %v1282_v23 = vmax.f32 %v1255_v6, 0.0  ;;  %v1123_v0 = vadd.f32 %v1122_v52, %v3460_v5  ;;  %v3017_v5 = vld [vmem:[%s4243_s7 + $0x18c] sm:$0xf] }
 0x174   : > { %v2886_v25 = vor.u32 %v3017_v5, %v2883_v11  ;;  %v2992_v5 = vld [vmem:[%s4243_s7 + $0xc0] sm:$0xf0] }
 0x175   : > { %v1124_v12 = vpop.f32.mrf.mxu3 }
 0x176   : > { %v1125_v2 = vadd.f32 %v1124_v12, %v1076_v3  ;;  %1958 = vmatpush.bf16.msra.mxu2 %v2886_v25 }
 0x178   : > { %v1256_v62 = vpop.f32.mrf.mxu2  ;;  %v1161_v15 = vpop.f32.mrf.mxu0 }
 0x179   : > { %v1257_v13 = vadd.f32 %v1256_v62, %v1208_v10  ;;  %v1210_v16 = vpop.f32.mrf.mxu1  ;;  %v1162_v20 = vadd.f32 %v1161_v15, %v1113_v27 }
 0x17b   : > { %v1283_v24 = vmax.f32 %v1257_v13, 0.0  ;;  %v1211_v14 = vadd.f32 %v1210_v16, %v1162_v20 }
 0x17d   : > { %v1294_v26 = vpack.c.bf16 %v1283_v24, %v1282_v23  ;;  %v2889_v24 = vld [vmem:[%s4243_s7 + $0x190] sm:$0xf] }
 0x17f   : > { %1394 = vmatmul.bf16.gmra.mxu3 %v1294_v26  ;;  %v3021_v26 = vld [vmem:[%s4243_s7 + $0x1a8] sm:$0xf0] }
 0x180   : > { %v1259_v32 = vpop.f32.mrf.mxu2  ;;  %v1163_v35 = vpop.f32.mrf.mxu0  ;;  %v2890_v27 = vor.u32 %v3021_v26, %v2889_v24 }
 0x181   : > { %v1212_v36 = vpop.f32.mrf.mxu1  ;;  %v1164_v37 = vadd.f32 %v1163_v35, %v1115_v33  ;;  %v1260_v21 = vadd.f32 %v1259_v32, %v1211_v14  ;;  %v3020_v32 = vld [vmem:[%s4243_s7 + $0x1a0] sm:$0xf0]  ;;  %v3523_v35 = vld [vmem:[%s4240_s4] ss:$0 sm:$0xff] }
 0x182   : > { %v2882_v33 = vor.u32 %v3020_v32, %v2881_v28  ;;  %2007 = vmatpush.bf16.msra.mxu3 %v2890_v27  ;;  %v2982_v32 = vld [vmem:[%s4243_s7 + $0x74] sm:$0xf] }
 0x183   : > { %v1213_v29 = vadd.f32 %v1212_v36, %v1164_v37  ;;  %v1284_v41 = vmax.f32 %v1260_v21, 0.0  ;;  %v3010_v21 = vld [vmem:[%s4243_s7 + $0x154] sm:$0xf] }
 0x184   : > { %1909 = vmatpush.bf16.msra.mxu1 %v2882_v33  ;;  %v2743_v33 = vld [vmem:[%s4243_s7 + $0x8c] sm:$0xf0] }
 0x188   : > { %v1261_v34 = vpop.f32.mrf.mxu2  ;;  %v1166_v31 = vpop.f32.mrf.mxu0 }
 0x189   : > { %v1262_v30 = vadd.f32 %v1261_v34, %v1213_v29  ;;  %v1215_v39 = vpop.f32.mrf.mxu1  ;;  %v1167_v44 = vadd.f32 %v1166_v31, %v1118_v47  ;;  %v2855_v29 = vld [vmem:[%s4243_s7 + $0x16c] sm:$0xf0]  ;;  %v2861_v34 = vld [vmem:[%s4243_s7 + $0x158] sm:$0xf]  ;;  %v3014_v31 = vld [vmem:[%s4243_s7 + $0x170] sm:$0xf0] }
 0x18b   : > { %v1285_v42 = vmax.f32 %v1262_v30, 0.0  ;;  %v1216_v57 = vadd.f32 %v1215_v39, %v1167_v44  ;;  %v2858_v30 = vor.u32 %v3010_v21, %v2855_v29  ;;  %v2862_v39 = vor.u32 %v3014_v31, %v2861_v34  ;;  %v2827_v44 = vld [vmem:[%s4243_s7 + $0x134] sm:$0xf0]  ;;  %v2985_v21 = vld [vmem:[%s4243_s7 + $0x88] sm:$0xf0] }
 0x18c   : > { %v2891_v31 = vld [vmem:[%s4243_s7 + $0x1ac] sm:$0xf0] }
 0x18d   : > { %v1295_v46 = vpack.c.bf16 %v1285_v42, %v1284_v41  ;;  %1959 = vmatpush.bf16.msra.mxu2 %v2858_v30  ;;  %v2854_v41 = vor.u32 %v3013_v19, %v2853_v40  ;;  %2008 = vmatpush.bf16.msra.mxu3 %v2862_v39  ;;  %v3018_v30 = vld [vmem:[%s4243_s7 + $0x194] sm:$0xf] }
 0x18e   : > { %v2894_v40 = vor.u32 %v3018_v30, %v2891_v31 }
 0x18f   : > { %1399 = vmatmul.bf16.gmra.mxu3 %v1295_v46  ;;  %1910 = vmatpush.bf16.msra.mxu1 %v2854_v41 }
 0x190   : > { %v1264_v49 = vpop.f32.mrf.mxu2  ;;  %v1168_v51 = vpop.f32.mrf.mxu0  ;;  %2056 = vmatpush.bf16.msrb.mxu0 %v2894_v40  ;;  %v2871_v40 = vld [vmem:[%s4243_s7 + $0x17c] sm:$0xf0] }
 0x191   : > { %v1217_v54 = vpop.f32.mrf.mxu1  ;;  %v1169_v38 = vadd.f32 %v1168_v51, %v1120_v50  ;;  %v1265_v45 = vadd.f32 %v1264_v49, %v1216_v57  ;;  %v3003_v50 = vld [vmem:[%s4243_s7 + $0x11c] sm:$0xf]  ;;  %v2833_v51 = vld [vmem:[%s4243_s7 + $0x120] sm:$0xf]  ;;  %v2825_v57 = vld [vmem:[%s4243_s7 + $0x118] sm:$0xf] }
 0x193   : > { %v1218_v58 = vadd.f32 %v1217_v54, %v1169_v38  ;;  %v1286_v43 = vmax.f32 %v1265_v45, 0.0  ;;  %v2830_v54 = vor.u32 %v3003_v50, %v2827_v44  ;;  %v3007_v38 = vld [vmem:[%s4243_s7 + $0x138] sm:$0xf0]  ;;  %v2826_v45 = vor.u32 %v3006_v53, %v2825_v57  ;;  %v2978_v57 = vld [vmem:[%s4243_s7 + $0x50] sm:$0xf0] }
 0x194   : > { %v2834_v52 = vor.u32 %v3007_v38, %v2833_v51  ;;  %v2979_v50 = vld [vmem:[%s4243_s7 + $0x58] sm:$0xf0]  ;;  %v2863_v51 = vld [vmem:[%s4243_s7 + $0x174] sm:$0xf0]  ;;  %v3004_v53 = vld [vmem:[%s4243_s7 + $0x124] sm:$0xf] }
 0x195   : > { %1960 = vmatpush.bf16.msra.mxu2 %v2830_v54  ;;  %1911 = vmatpush.bf16.msra.mxu1 %v2826_v45  ;;  %v3011_v44 = vld [vmem:[%s4243_s7 + $0x15c] sm:$0xf] }
 0x196   : > { %2009 = vmatpush.bf16.msra.mxu3 %v2834_v52  ;;  %v2866_v38 = vor.u32 %v3011_v44, %v2863_v51  ;;  %v2713_v52 = vld [vmem:[%s4243_s7 + $0x38] sm:$0xf] }
 0x197   : > { %v2714_v45 = vor.u32 %v2978_v57, %v2713_v52 }
 0x198   : > { %v1266_v59 = vpop.f32.mrf.mxu2  ;;  %v1171_v55 = vpop.f32.mrf.mxu0  ;;  %2057 = vmatpush.bf16.msrb.mxu0 %v2866_v38 }
 0x199   : > { %v1267_v60 = vadd.f32 %v1266_v59, %v1218_v58  ;;  %v1220_v1 = vpop.f32.mrf.mxu1  ;;  %v1172_v22 = vadd.f32 %v1171_v55, %v1123_v0  ;;  %v2797_v0 = vld [vmem:[%s4243_s7 + $0xe0] sm:$0xf] }
 0x19b   : > { %v1287_v61 = vmax.f32 %v1267_v60, 0.0  ;;  %v1221_v6 = vadd.f32 %v1220_v1, %v1172_v22  ;;  %v2805_v1 = vld [vmem:[%s4243_s7 + $0xe8] sm:$0xf] }
 0x19d   : > { %v1296_v4 = vpack.c.bf16 %v1287_v61, %v1286_v43  ;;  %v2996_v43 = vld [vmem:[%s4243_s7 + $0xe4] sm:$0xf]  ;;  %v2799_v61 = vld [vmem:[%s4243_s7 + $0xfc] sm:$0xf0] }
 0x19e   : > { %v2802_v3 = vor.u32 %v2996_v43, %v2799_v61  ;;  %v2997_v61 = vld [vmem:[%s4243_s7 + $0xec] sm:$0xf] }
 0x19f   : > { %1404 = vmatmul.bf16.gmra.mxu3 %v1296_v4  ;;  %v3000_v4 = vld [vmem:[%s4243_s7 + $0x100] sm:$0xf0] }
 0x1a0   : > { %v1269_v56 = vpop.f32.mrf.mxu2  ;;  %v1173_v7 = vpop.f32.mrf.mxu0  ;;  %v2806_v12 = vor.u32 %v3000_v4, %v2805_v1  ;;  %1961 = vmatpush.bf16.msra.mxu2 %v2802_v3  ;;  %v2807_v1 = vld [vmem:[%s4243_s7 + $0x104] sm:$0xf0]  ;;  %v2972_v4 = vld [vmem:[%s4243_s7 + $0x20] sm:$0xf0] }
 0x1a1   : > { %v1174_v8 = vadd.f32 %v1173_v7, %v1125_v2  ;;  %v1222_v10 = vpop.f32.mrf.mxu1  ;;  %v1270_v62 = vadd.f32 %v1269_v56, %v1221_v6  ;;  %v2999_v56 = vld [vmem:[%s4243_s7 + $0xf8] sm:$0xf0] }
 0x1a2   : > { %v2798_v2 = vor.u32 %v2999_v56, %v2797_v0  ;;  %2010 = vmatpush.bf16.msra.mxu3 %v2806_v12  ;;  %v2810_v0 = vor.u32 %v2997_v61, %v2807_v1  ;;  %v2990_v56 = vld [vmem:[%s4243_s7 + $0xb4] sm:$0xf]  ;;  %v3008_v61 = vld [vmem:[%s4243_s7 + $0x140] sm:$0xf0] }
 0x1a3   : > { %v1223_v13 = vadd.f32 %v1222_v10, %v1174_v8  ;;  %v1288_v16 = vmax.f32 %v1270_v62, 0.0  ;;  %v2989_v62 = vld [vmem:[%s4243_s7 + $0xac] sm:$0xf] }
 0x1a4   : > { %1912 = vmatpush.bf16.msra.mxu1 %v2798_v2  ;;  %v2779_v2 = vld [vmem:[%s4243_s7 + $0xcc] sm:$0xf0] }
 0x1a8   : > { %v1271_v9 = vpop.f32.mrf.mxu2 }
 0x1a9   : > { %v1272_v15 = vadd.f32 %v1271_v9, %v1223_v13  ;;  %v2771_v13 = vld [vmem:[%s4243_s7 + $0xc4] sm:$0xf0]  ;;  %v2777_v9 = vld [vmem:[%s4243_s7 + $0xb0] sm:$0xf] }
 0x1ab   : > { %v1289_v18 = vmax.f32 %v1272_v15, 0.0  ;;  %v2774_v15 = vor.u32 %v2989_v62, %v2771_v13  ;;  %v2983_v62 = vld [vmem:[%s4243_s7 + $0x7c] sm:$0xf]  ;;  %v2751_v13 = vld [vmem:[%s4243_s7 + $0x94] sm:$0xf0] }
 0x1ad   : > { %v1297_v23 = vpack.c.bf16 %v1289_v18, %v1288_v16  ;;  %v2993_v16 = vld [vmem:[%s4243_s7 + $0xc8] sm:$0xf0]  ;;  %1962 = vmatpush.bf16.msra.mxu2 %v2774_v15  ;;  %v2685_v15 = vld [vmem:[%s4243_s7] sm:$0xf] }
 0x1ae   : > { %v2778_v18 = vor.u32 %v2993_v16, %v2777_v9  ;;  %v2754_v9 = vor.u32 %v2983_v62, %v2751_v13  ;;  %v2971_v16 = vld [vmem:[%s4243_s7 + $0x18] sm:$0xf0]  ;;  %v3002_v62 = vld [vmem:[%s4243_s7 + $0x110] sm:$0xf0] }
 0x1af   : > { %1409 = vmatmul.bf16.gmra.mxu3 %v1297_v23  ;;  %v2769_v23 = vld [vmem:[%s4243_s7 + $0xa8] sm:$0xf] }
 0x1b0   : > { %v2770_v11 = vor.u32 %v2992_v5, %v2769_v23  ;;  %2011 = vmatpush.bf16.msra.mxu3 %v2778_v18  ;;  %v2686_v18 = vor.u32 %v2971_v16, %v2685_v15  ;;  %v2976_v23 = vld [vmem:[%s4243_s7 + $0x44] sm:$0xf]  ;;  %v2723_v5 = vld [vmem:[%s4243_s7 + $0x5c] sm:$0xf0]  ;;  %v3001_v15 = vld [vmem:[%s4243_s7 + $0x108] sm:$0xf0] }
 0x1b2   : > { %1913 = vmatpush.bf16.msra.mxu1 %v2770_v11 }
 0x1c2   : > { %v1375_v20 = vpop.f32.mrf.mxu3 }
 0x1c3   : > { %v1376_v37 = vadd.f32 %v3523_v35, %v1375_v20  ;;  %v2749_v20 = vld [vmem:[%s4243_s7 + $0x78] sm:$0xf] }
 0x1ca   : > { %v1377_v36 = vpop.f32.mrf.mxu3 }
 0x1cb   : > { %v1378_v14 = vadd.f32 %v3523_v35, %v1377_v36  ;;  %v2746_v36 = vor.u32 %v2982_v32, %v2743_v33 }
 0x1cd   : > { %v1415_v17 = vpack.c.bf16 %v1378_v14, %v1376_v37  ;;  %v2986_v37 = vld [vmem:[%s4243_s7 + $0x90] sm:$0xf0]  ;;  %1963 = vmatpush.bf16.msra.mxu2 %v2746_v36  ;;  %v2899_v36 = vld [vmem:[%s4243_s7 + $0x1b4] sm:$0xf0] }
 0x1ce   : > { %v2750_v14 = vor.u32 %v2986_v37, %v2749_v20  ;;  %v3019_v20 = vld [vmem:[%s4243_s7 + $0x19c] sm:$0xf]  ;;  %v2905_v37 = vld [vmem:[%s4243_s7 + $0x1a0] sm:$0xf] }
 0x1cf   : > { %2675 = vmatmul.msk.bf16.vlgmr.msra.gmra.mxu0 %vm1443_vm1, %v1415_v17  ;;  %v2741_v17 = vld [vmem:[%s4243_s7 + $0x70] sm:$0xf] }
 0x1d0   : > { %v2742_v29 = vor.u32 %v2985_v21, %v2741_v17  ;;  %2012 = vmatpush.bf16.msra.mxu3 %v2750_v14  ;;  %v2902_v17 = vor.u32 %v3019_v20, %v2899_v36  ;;  %v3023_v21 = vld [vmem:[%s4243_s7 + $0x1b8] sm:$0xf0] }
 0x1d1   : > { %v2995_v20 = vld [vmem:[%s4243_s7 + $0xd8] sm:$0xf0] }
 0x1d2   : > { %v1380_v42 = vpop.f32.mrf.mxu3  ;;  %1914 = vmatpush.bf16.msra.mxu1 %v2742_v29  ;;  %v2906_v29 = vor.u32 %v3023_v21, %v2905_v37  ;;  %v2785_v37 = vld [vmem:[%s4243_s7 + $0xb8] sm:$0xf] }
 0x1d3   : > { %v1381_v46 = vadd.f32 %v3523_v35, %v1380_v42 }
 0x1d6   : > { %1915 = vmatpush.bf16.msra.mxu1 %v2714_v45  ;;  %v3005_v45 = vld [vmem:[%s4243_s7 + $0x12c] sm:$0xf] }
 0x1da   : > { %v1382_v48 = vpop.f32.mrf.mxu3  ;;  %1916 = vmatpush.bf16.msra.mxu1 %v2686_v18 }
 0x1db   : > { %v1383_v47 = vadd.f32 %v3523_v35, %v1382_v48  ;;  %v2975_v48 = vld [vmem:[%s4243_s7 + $0x3c] sm:$0xf] }
 0x1dd   : > { %v1416_v49 = vpack.c.bf16 %v1383_v47, %v1381_v46  ;;  %v2715_v46 = vld [vmem:[%s4243_s7 + $0x54] sm:$0xf0]  ;;  %v2721_v47 = vld [vmem:[%s4243_s7 + $0x40] sm:$0xf] }
 0x1de   : > { %v2722_v54 = vor.u32 %v2979_v50, %v2721_v47  ;;  %v2869_v47 = vld [vmem:[%s4243_s7 + $0x160] sm:$0xf] }
 0x1df   : > { %2676 = vmatmul.msk.bf16.gmra.mxu0 %vm1443_vm1, %v1416_v49  ;;  %v2718_v49 = vor.u32 %v2975_v48, %v2715_v46  ;;  %v3756_v46 = vld [vmem:[%s4242_s6] ss:$0 sm:$0xff] }
 0x1e0   : > { %2013 = vmatpush.bf16.msra.mxu3 %v2722_v54 }
 0x1e1   : > { %1964 = vmatpush.bf16.msra.mxu2 %v2718_v49  ;;  %v3015_v49 = vld [vmem:[%s4243_s7 + $0x178] sm:$0xf0] }
 0x1e2   : > { %v1385_v58 = vpop.f32.mrf.mxu3  ;;  %v2870_v50 = vor.u32 %v3015_v49, %v2869_v47  ;;  %v2757_v49 = vld [vmem:[%s4243_s7 + $0x80] sm:$0xf] }
 0x1e3   : > { %v1386_v60 = vadd.f32 %v3523_v35, %v1385_v58  ;;  %v2835_v58 = vld [vmem:[%s4243_s7 + $0x13c] sm:$0xf0] }
 0x1ea   : > { %v1387_v59 = vpop.f32.mrf.mxu3 }
 0x1eb   : > { %v1388_v55 = vadd.f32 %v3523_v35, %v1387_v59  ;;  %v2838_v59 = vor.u32 %v3004_v53, %v2835_v58  ;;  %v2843_v58 = vld [vmem:[%s4243_s7 + $0x144] sm:$0xf0] }
 0x1ed   : > { %v1417_v63 = vpack.c.bf16 %v1388_v55, %v1386_v60  ;;  %v2968_v60 = vld [vmem:[%s4243_s7 + $0x4] sm:$0xf]  ;;  %v2687_v55 = vld [vmem:[%s4243_s7 + $0x1c] sm:$0xf0]  ;;  %2058 = vmatpush.bf16.msrb.mxu0 %v2838_v59  ;;  %v2849_v59 = vld [vmem:[%s4243_s7 + $0x130] sm:$0xf] }
 0x1ee   : > { %v2690_v3 = vor.u32 %v2968_v60, %v2687_v55  ;;  %v2846_v60 = vor.u32 %v3005_v45, %v2843_v58  ;;  %v3009_v55 = vld [vmem:[%s4243_s7 + $0x148] sm:$0xf0] }
 0x1ef   : > { %2677 = vmatmul.msk.bf16.gmra.mxu0 %vm1443_vm1, %v1417_v63  ;;  %v2693_v63 = vld [vmem:[%s4243_s7 + $0x8] sm:$0xf] }
 0x1f0   : > { %v2694_v12 = vor.u32 %v2972_v4, %v2693_v63  ;;  %1965 = vmatpush.bf16.msra.mxu2 %v2690_v3  ;;  %v2850_v63 = vor.u32 %v3009_v55, %v2849_v59  ;;  %v2977_v59 = vld [vmem:[%s4243_s7 + $0x4c] sm:$0xf]  ;;  %v2737_v55 = vld [vmem:[%s4243_s7 + $0x50] sm:$0xf] }
 0x1f1   : > { %2059 = vmatpush.bf16.msrb.mxu0 %v2810_v0 }
 0x1f2   : > { %v1390_v22 = vpop.f32.mrf.mxu3  ;;  %2014 = vmatpush.bf16.msra.mxu3 %v2694_v12 }
 0x1f3   : > { %v1391_v8 = vadd.f32 %v3523_v35, %v1390_v22 }
 0x1f4   : > { %2154 = vmatpush.bf16.msrb.mxu2 %v2902_v17 }
 0x1f6   : > { %2203 = vmatpush.bf16.msrb.mxu3 %v2906_v29 }
 0x1fa   : > { %v1392_v7 = vpop.f32.mrf.mxu3 }
 0x1fb   : > { %v1393_v6 = vadd.f32 %v3523_v35, %v1392_v7  ;;  %v2782_v7 = vor.u32 %v2990_v56, %v2779_v2 }
 0x1fd   : > { %v1418_v10 = vpack.c.bf16 %v1393_v6, %v1391_v8  ;;  %2060 = vmatpush.bf16.msrb.mxu0 %v2782_v7  ;;  %v2998_v7 = vld [vmem:[%s4243_s7 + $0xf4] sm:$0xf] }
 0x1ff   : > { %2678 = vmatmul.msk.bf16.gmra.mxu0 %vm1443_vm1, %v1418_v10 }
 0x201   : > { %2061 = vmatpush.bf16.msrb.mxu0 %v2754_v9  ;;  %v2813_v9 = vld [vmem:[%s4243_s7 + $0xf0] sm:$0xf] }
 0x202   : > { %v1395_v24 = vpop.f32.mrf.mxu3  ;;  %v2814_v16 = vor.u32 %v3001_v15, %v2813_v9  ;;  %v2974_v15 = vld [vmem:[%s4243_s7 + $0x30] sm:$0xf0] }
 0x203   : > { %v1396_v26 = vadd.f32 %v3523_v35, %v1395_v24  ;;  %v2726_v24 = vor.u32 %v2976_v23, %v2723_v5 }
 0x205   : > { %2062 = vmatpush.bf16.msrb.mxu0 %v2726_v24 }
 0x20a   : > { %v1397_v25 = vpop.f32.mrf.mxu3 }
 0x20b   : > { %v1398_v27 = vadd.f32 %v3523_v35, %v1397_v25  ;;  %v2969_v25 = vld [vmem:[%s4243_s7 + $0xc] sm:$0xf] }
 0x20d   : > { %v1419_v28 = vpack.c.bf16 %v1398_v27, %v1396_v26  ;;  %v2695_v26 = vld [vmem:[%s4243_s7 + $0x24] sm:$0xf0] }
 0x20e   : > { %v2698_v27 = vor.u32 %v2969_v25, %v2695_v26 }
 0x20f   : > { %2679 = vmatmul.msk.bf16.gmra.mxu0 %vm1443_vm1, %v1419_v28 }
 0x210   : > { %2063 = vmatpush.bf16.msrb.mxu0 %v2698_v27  ;;  %v2991_v27 = vld [vmem:[%s4243_s7 + $0xbc] sm:$0xf] }
 0x212   : > { %v1400_v34 = vpop.f32.mrf.mxu3 }
 0x213   : > { %v1401_v19 = vadd.f32 %v3523_v35, %v1400_v34  ;;  %v3022_v34 = vld [vmem:[%s4243_s7 + $0x1b0] sm:$0xf0] }
 0x21a   : > { %v1402_v39 = vpop.f32.mrf.mxu3 }
 0x21b   : > { %v1403_v41 = vadd.f32 %v3523_v35, %v1402_v39  ;;  %v3012_v39 = vld [vmem:[%s4243_s7 + $0x164] sm:$0xf] }
 0x21d   : > { %v1420_v42 = vpack.c.bf16 %v1403_v41, %v1401_v19  ;;  %v2877_v19 = vld [vmem:[%s4243_s7 + $0x168] sm:$0xf]  ;;  %v2874_v41 = vor.u32 %v3012_v39, %v2871_v40  ;;  %v2984_v40 = vld [vmem:[%s4243_s7 + $0x84] sm:$0xf] }
 0x21f   : > { %2680 = vmatmul.msk.bf16.gmra.mxu0 %vm1443_vm1, %v1420_v42  ;;  %v3016_v42 = vld [vmem:[%s4243_s7 + $0x180] sm:$0xf0]  ;;  %2155 = vmatpush.bf16.msrb.mxu2 %v2874_v41  ;;  %v2765_v41 = vld [vmem:[%s4243_s7 + $0x88] sm:$0xf] }
 0x220   : > { %v2878_v48 = vor.u32 %v3016_v42, %v2877_v19  ;;  %v2759_v19 = vld [vmem:[%s4243_s7 + $0x9c] sm:$0xf0] }
 0x221   : > { %v2762_v42 = vor.u32 %v2984_v40, %v2759_v19 }
 0x222   : > { %v1405_v43 = vpop.f32.mrf.mxu3  ;;  %2204 = vmatpush.bf16.msrb.mxu3 %v2878_v48  ;;  %v2988_v48 = vld [vmem:[%s4243_s7 + $0xa0] sm:$0xf0] }
 0x223   : > { %v1406_v8 = vadd.f32 %v3523_v35, %v1405_v43  ;;  %2156 = vmatpush.bf16.msrb.mxu2 %v2846_v60  ;;  %v2841_v43 = vld [vmem:[%s4243_s7 + $0x128] sm:$0xf]  ;;  %v2766_v47 = vor.u32 %v2988_v48, %v2765_v41 }
 0x224   : > { %v2842_v1 = vor.u32 %v3008_v61, %v2841_v43  ;;  %v2731_v60 = vld [vmem:[%s4243_s7 + $0x64] sm:$0xf0]  ;;  %v2981_v43 = vld [vmem:[%s4243_s7 + $0x68] sm:$0xf0] }
 0x225   : > { %v2738_v61 = vor.u32 %v2981_v43, %v2737_v55 }
 0x226   : > { %2205 = vmatpush.bf16.msrb.mxu3 %v2850_v63  ;;  %v2734_v63 = vor.u32 %v2977_v59, %v2731_v60 }
 0x22a   : > { %v1407_v22 = vpop.f32.mrf.mxu3 }
 0x22b   : > { %v1408_v6 = vadd.f32 %v3523_v35, %v1407_v22 }
 0x22d   : > { %v1421_v10 = vpack.c.bf16 %v1408_v6, %v1406_v8  ;;  %v2815_v8 = vld [vmem:[%s4243_s7 + $0x10c] sm:$0xf0]  ;;  %v2821_v6 = vld [vmem:[%s4243_s7 + $0xf8] sm:$0xf] }
 0x22e   : > { %v2822_v13 = vor.u32 %v3002_v62, %v2821_v6  ;;  %v2703_v62 = vld [vmem:[%s4243_s7 + $0x2c] sm:$0xf0] }
 0x22f   : > { %2681 = vmatmul.msk.bf16.gmra.mxu0 %vm1443_vm1, %v1421_v10  ;;  %v2818_v10 = vor.u32 %v2998_v7, %v2815_v8 }
 0x230   : > { %2206 = vmatpush.bf16.msrb.mxu3 %v2822_v13  ;;  %v2709_v13 = vld [vmem:[%s4243_s7 + $0x18] sm:$0xf] }
 0x231   : > { %2157 = vmatpush.bf16.msrb.mxu2 %v2818_v10  ;;  %v2970_v10 = vld [vmem:[%s4243_s7 + $0x14] sm:$0xf] }
 0x232   : > { %v1410_v11 = vpop.f32.mrf.mxu3  ;;  %v2706_v9 = vor.u32 %v2970_v10, %v2703_v62 }
 0x233   : > { %v1411_v32 = vadd.f32 %v3523_v35, %v1410_v11 }
 0x23a   : > { %v1412_v28 = vpop.f32.mrf.mxu3 }
 0x23b   : > { %v1413_v33 = vadd.f32 %v3523_v35, %v1412_v28  ;;  %v2897_v35 = vld [vmem:[%s4243_s7 + $0x198] sm:$0xf] }
 0x23c   : > { %v2898_v30 = vor.u32 %v3022_v34, %v2897_v35  ;;  %v2787_v28 = vld [vmem:[%s4243_s7 + $0xd4] sm:$0xf0] }
 0x23d   : > { %v1422_v14 = vpack.c.bf16 %v1413_v33, %v1411_v32  ;;  %v2793_v32 = vld [vmem:[%s4243_s7 + $0xc0] sm:$0xf]  ;;  %v2790_v33 = vor.u32 %v2991_v27, %v2787_v28 }
 0x23e   : > { %2105 = vmatpush.bf16.msrb.mxu1 %v2898_v30  ;;  %v2794_v36 = vor.u32 %v2995_v20, %v2793_v32 }
 0x23f   : > { %2682 = vmatmul.msk.bf16.gmra.mxu0 %vm1443_vm1, %v1422_v14  ;;  %2158 = vmatpush.bf16.msrb.mxu2 %v2790_v33  ;;  %v2994_v14 = vld [vmem:[%s4243_s7 + $0xd0] sm:$0xf0] }
 0x240   : > { %2207 = vmatpush.bf16.msrb.mxu3 %v2794_v36  ;;  %v2786_v17 = vor.u32 %v2994_v14, %v2785_v37 }
 0x242   : > { %2106 = vmatpush.bf16.msrb.mxu1 %v2870_v50  ;;  %v2987_v50 = vld [vmem:[%s4243_s7 + $0x98] sm:$0xf0] }
 0x243   : > { %2159 = vmatpush.bf16.msrb.mxu2 %v2762_v42 }
 0x244   : > { %2208 = vmatpush.bf16.msrb.mxu3 %v2766_v47 }
 0x246   : > { %2107 = vmatpush.bf16.msrb.mxu1 %v2842_v1  ;;  %v2729_v1 = vld [vmem:[%s4243_s7 + $0x48] sm:$0xf] }
 0x247   : > { %2160 = vmatpush.bf16.msrb.mxu2 %v2734_v63 }
 0x248   : > { %2209 = vmatpush.bf16.msrb.mxu3 %v2738_v61 }
 0x24a   : > { %2108 = vmatpush.bf16.msrb.mxu1 %v2814_v16  ;;  %v2701_v16 = vld [vmem:[%s4243_s7 + $0x10] sm:$0xf] }
 0x24b   : > { %2161 = vmatpush.bf16.msrb.mxu2 %v2706_v9 }
 0x24c   : > { %v1477_v31 = vpop.f32.mrf.mxu0 }
 0x24d   : > { %v1478_v44 = vadd.f32 %v3756_v46, %v1477_v31 }
 0x24e   : > { %2109 = vmatpush.bf16.msrb.mxu1 %v2786_v17 }
 0x24f   : > { %v1517_v38 = vmax.f32 %v1478_v44, 0.0  ;;  %v2758_v44 = vor.u32 %v2987_v50, %v2757_v49 }
 0x252   : > { %2110 = vmatpush.bf16.msrb.mxu1 %v2758_v44 }
 0x254   : > { %v1479_v51 = vpop.f32.mrf.mxu0 }
 0x255   : > { %v1480_v54 = vadd.f32 %v3756_v46, %v1479_v51 }
 0x257   : > { %v1518_v52 = vmax.f32 %v1480_v54, 0.0 }
 0x259   : > { %v3766_v57 = vpack.c.bf16 %v1518_v52, %v1517_v38 }
 0x25b   : > { %1917 = vmatmul.bf16.vlgmr.msra.gmra.mxu1 %v3766_v57  ;;  %1966 = vmatmul.bf16.vlgmr.msra.gmra.mxu2 %v3766_v57 }
 0x25c   : > { %2015 = vmatmul.bf16.vlgmr.msra.gmra.mxu3 %v3766_v57  ;;  %2064 = vmatmul.bf16.vlgmr.msrb.gmra.mxu0 %v3766_v57  ;;  %v1482_v53 = vpop.f32.mrf.mxu0 }
 0x25d   : > { %v1483_v3 = vadd.f32 %v3756_v46, %v1482_v53 }
 0x25f   : > { %v1519_v0 = vmax.f32 %v1483_v3, 0.0  ;;  %v2980_v3 = vld [vmem:[%s4243_s7 + $0x60] sm:$0xf0] }
 0x264   : > { %v1484_v4 = vpop.f32.mrf.mxu0 }
 0x265   : > { %v1485_v12 = vadd.f32 %v3756_v46, %v1484_v4  ;;  %v2730_v4 = vor.u32 %v2980_v3, %v2729_v1 }
 0x267   : > { %v1520_v56 = vmax.f32 %v1485_v12, 0.0  ;;  %2111 = vmatpush.bf16.msrb.mxu1 %v2730_v4 }
 0x269   : > { %v3792_v2 = vpack.c.bf16 %v1520_v56, %v1519_v0 }
 0x26b   : > { %1922 = vmatmul.bf16.gmra.mxu1 %v3792_v2  ;;  %1971 = vmatmul.bf16.gmra.mxu2 %v3792_v2 }
 0x26c   : > { %2020 = vmatmul.bf16.gmra.mxu3 %v3792_v2  ;;  %2069 = vmatmul.bf16.gmra.mxu0 %v3792_v2  ;;  %v1487_v22 = vpop.f32.mrf.mxu0 }
 0x26d   : > { %v1488_v18 = vadd.f32 %v3756_v46, %v1487_v22 }
 0x26f   : > { %v1521_v11 = vmax.f32 %v1488_v18, 0.0  ;;  %v2973_v18 = vld [vmem:[%s4243_s7 + $0x28] sm:$0xf0] }
 0x274   : > { %v1489_v23 = vpop.f32.mrf.mxu0 }
 0x275   : > { %v1490_v5 = vadd.f32 %v3756_v46, %v1489_v23  ;;  %v2710_v23 = vor.u32 %v2974_v15, %v2709_v13 }
 0x277   : > { %v1522_v24 = vmax.f32 %v1490_v5, 0.0  ;;  %v2702_v5 = vor.u32 %v2973_v18, %v2701_v16  ;;  %2210 = vmatpush.bf16.msrb.mxu3 %v2710_v23 }
 0x279   : > { %v3818_v25 = vpack.c.bf16 %v1522_v24, %v1521_v11  ;;  %2112 = vmatpush.bf16.msrb.mxu1 %v2702_v5 }
 0x27b   : > { %1927 = vmatmul.bf16.gmra.mxu1 %v3818_v25  ;;  %1976 = vmatmul.bf16.gmra.mxu2 %v3818_v25 }
 0x27c   : > { %2025 = vmatmul.bf16.gmra.mxu3 %v3818_v25  ;;  %2074 = vmatmul.bf16.gmra.mxu0 %v3818_v25  ;;  %v1492_v26 = vpop.f32.mrf.mxu0 }
 0x27d   : > { %v1493_v21 = vadd.f32 %v3756_v46, %v1492_v26 }
 0x27f   : > { %v1523_v34 = vmax.f32 %v1493_v21, 0.0 }
 0x284   : > { %v1494_v29 = vpop.f32.mrf.mxu0 }
 0x285   : > { %v1495_v35 = vadd.f32 %v3756_v46, %v1494_v29  ;;  %v3939_v29 = vld [vmem:[%s4244_s8] sm:$0x7f] }
 0x286   : > { %v3960_v19 = vperm.slane %v3939_v29, 1  ;;  %v3965_v41 = vperm.slane %v3939_v29, 2 }
 0x287   : > { %v1524_v30 = vmax.f32 %v1495_v35, 0.0  ;;  %v3942_v35 = vperm.slane %v3939_v29, 0 }
 0x289   : > { %v3844_v31 = vpack.c.bf16 %v1524_v30, %v1523_v34 }
 0x28b   : > { %1932 = vmatmul.bf16.gmra.mxu1 %v3844_v31  ;;  %1981 = vmatmul.bf16.gmra.mxu2 %v3844_v31 }
 0x28c   : > { %2030 = vmatmul.bf16.gmra.mxu3 %v3844_v31  ;;  %2079 = vmatmul.bf16.gmra.mxu0 %v3844_v31  ;;  %v1497_v39 = vpop.f32.mrf.mxu0 }
 0x28d   : > { %v1498_v51 = vadd.f32 %v3756_v46, %v1497_v39 }
 0x28f   : > { %v1525_v52 = vmax.f32 %v1498_v51, 0.0 }
 0x294   : > { %v1499_v54 = vpop.f32.mrf.mxu0 }
 0x295   : > { %v1500_v38 = vadd.f32 %v3756_v46, %v1499_v54 }
 0x297   : > { %v1526_v53 = vmax.f32 %v1500_v38, 0.0 }
 0x299   : > { %v3870_v45 = vpack.c.bf16 %v1526_v53, %v1525_v52 }
 0x29b   : > { %1937 = vmatmul.bf16.gmra.mxu1 %v3870_v45  ;;  %1986 = vmatmul.bf16.gmra.mxu2 %v3870_v45 }
 0x29c   : > { %2035 = vmatmul.bf16.gmra.mxu3 %v3870_v45  ;;  %2084 = vmatmul.bf16.gmra.mxu0 %v3870_v45  ;;  %v1502_v58 = vpop.f32.mrf.mxu0 }
 0x29d   : > { %v1503_v12 = vadd.f32 %v3756_v46, %v1502_v58 }
 0x29f   : > { %v1527_v22 = vmax.f32 %v1503_v12, 0.0 }
 0x2a4   : > { %v1504_v0 = vpop.f32.mrf.mxu0 }
 0x2a5   : > { %v1505_v56 = vadd.f32 %v3756_v46, %v1504_v0 }
 0x2a7   : > { %v1528_v7 = vmax.f32 %v1505_v56, 0.0 }
 0x2a9   : > { %v3896_v8 = vpack.c.bf16 %v1528_v7, %v1527_v22 }
 0x2ab   : > { %1942 = vmatmul.bf16.gmra.mxu1 %v3896_v8  ;;  %1991 = vmatmul.bf16.gmra.mxu2 %v3896_v8 }
 0x2ac   : > { %2040 = vmatmul.bf16.gmra.mxu3 %v3896_v8  ;;  %2089 = vmatmul.bf16.gmra.mxu0 %v3896_v8  ;;  %v1507_v6 = vpop.f32.mrf.mxu0 }
 0x2ad   : > { %v1508_v11 = vadd.f32 %v3756_v46, %v1507_v6 }
 0x2af   : > { %v1529_v27 = vmax.f32 %v1508_v11, 0.0 }
 0x2b4   : > { %v1509_v24 = vpop.f32.mrf.mxu0 }
 0x2b5   : > { %v1510_v26 = vadd.f32 %v3756_v46, %v1509_v24 }
 0x2b7   : > { %v1530_v28 = vmax.f32 %v1510_v26, 0.0 }
 0x2b9   : > { %v3922_v32 = vpack.c.bf16 %v1530_v28, %v1529_v27 }
 0x2bb   : > { %1947 = vmatmul.bf16.gmra.mxu1 %v3922_v32  ;;  %1996 = vmatmul.bf16.gmra.mxu2 %v3922_v32 }
 0x2bc   : > { %2045 = vmatmul.bf16.gmra.mxu3 %v3922_v32  ;;  %2094 = vmatmul.bf16.gmra.mxu0 %v3922_v32  ;;  %v1512_v33 = vpop.f32.mrf.mxu0 }
 0x2bd   : > { %v1513_v20 = vadd.f32 %v3756_v46, %v1512_v33 }
 0x2bf   : > { %v1531_v14 = vmax.f32 %v1513_v20, 0.0 }
 0x2c4   : > { %v1514_v36 = vpop.f32.mrf.mxu0 }
 0x2c5   : > { %v1515_v37 = vadd.f32 %v3756_v46, %v1514_v36  ;;  %v3945_v46 = vperm.slane %v3939_v29, 3 }
 0x2c7   : > { %v1532_v17 = vmax.f32 %v1515_v37, 0.0 }
 0x2c9   : > { %v3930_v21 = vpack.c.bf16 %v1532_v17, %v1531_v14 }
 0x2cb   : > { %1952 = vmatmul.bf16.gmra.mxu1 %v3930_v21  ;;  %2001 = vmatmul.bf16.gmra.mxu2 %v3930_v21 }
 0x2cc   : > { %2050 = vmatmul.bf16.gmra.mxu3 %v3930_v21  ;;  %2099 = vmatmul.bf16.gmra.mxu0 %v3930_v21 }
 0x2d8   : > { %v1918_v34 = vpop.f32.mrf.mxu1 }
 0x2d9   : > { %v1919_v30 = vadd.f32 %v1918_v34, %v3942_v35  ;;  %v2065_v39 = vpop.f32.mrf.mxu0 }
 0x2da   : > { %v2066_v40 = vadd.f32 %v2065_v39, %v3945_v46 }
 0x2db   : > { %2252 = vst [vmem:[%s3952_s25] sm:$0xff] %v1919_v30  ;;  %2113 = vmatmul.bf16.vlgmr.msrb.gmra.mxu1 %v3766_v57  ;;  %2162 = vmatmul.bf16.vlgmr.msrb.gmra.mxu2 %v3766_v57 }
 0x2dc   : > { %2255 = vst [vmem:[%s3952_s25 + $0x18] sm:$0xff] %v2066_v40  ;;  %2211 = vmatmul.bf16.vlgmr.msrb.gmra.mxu3 %v3766_v57 }
 0x2de   : > { %v1967_v42 = vpop.f32.mrf.mxu2 }
 0x2df   : > { %v1968_v48 = vadd.f32 %v1967_v42, %v3960_v19  ;;  %v2016_v47 = vpop.f32.mrf.mxu3 }
 0x2e0   : > { %v2017_v49 = vadd.f32 %v2016_v47, %v3965_v41  ;;  %v1920_v50 = vpop.f32.mrf.mxu1 }
 0x2e1   : > { %2253 = vst [vmem:[%s3952_s25 + $0x8] sm:$0xff] %v1968_v48  ;;  %v1921_v44 = vadd.f32 %v1920_v50, %v3942_v35  ;;  %v2067_v51 = vpop.f32.mrf.mxu0 }
 0x2e2   : > { %2254 = vst [vmem:[%s3952_s25 + $0x10] sm:$0xff] %v2017_v49  ;;  %v2068_v57 = vadd.f32 %v2067_v51, %v3945_v46 }
 0x2e3   : > { %2259 = vst [vmem:[%s3952_s25 + $0x38] sm:$0xff] %v1921_v44 }
 0x2e4   : > { %2262 = vst [vmem:[%s3952_s25 + $0x50] sm:$0xff] %v2068_v57 }
 0x2e6   : > { %v1969_v54 = vpop.f32.mrf.mxu2 }
 0x2e7   : > { %v1970_v38 = vadd.f32 %v1969_v54, %v3960_v19  ;;  %v2018_v52 = vpop.f32.mrf.mxu3 }
 0x2e8   : > { %v2019_v53 = vadd.f32 %v2018_v52, %v3965_v41  ;;  %v1923_v58 = vpop.f32.mrf.mxu1 }
 0x2e9   : > { %2260 = vst [vmem:[%s3952_s25 + $0x40] sm:$0xff] %v1970_v38  ;;  %v1924_v59 = vadd.f32 %v1923_v58, %v3942_v35  ;;  %v2070_v60 = vpop.f32.mrf.mxu0 }
 0x2ea   : > { %2261 = vst [vmem:[%s3952_s25 + $0x48] sm:$0xff] %v2019_v53  ;;  %v2071_v55 = vadd.f32 %v2070_v60, %v3945_v46 }
 0x2eb   : > { %2266 = vst [vmem:[%s3952_s25 + $0x70] sm:$0xff] %v1924_v59  ;;  %2118 = vmatmul.bf16.gmra.mxu1 %v3792_v2  ;;  %2167 = vmatmul.bf16.gmra.mxu2 %v3792_v2 }
 0x2ec   : > { %2269 = vst [vmem:[%s3952_s25 + $0x88] sm:$0xff] %v2071_v55  ;;  %2216 = vmatmul.bf16.gmra.mxu3 %v3792_v2 }
 0x2ee   : > { %v1972_v63 = vpop.f32.mrf.mxu2 }
 0x2ef   : > { %v1973_v43 = vadd.f32 %v1972_v63, %v3960_v19  ;;  %v2021_v61 = vpop.f32.mrf.mxu3 }
 0x2f0   : > { %v2022_v1 = vadd.f32 %v2021_v61, %v3965_v41  ;;  %v1925_v3 = vpop.f32.mrf.mxu1 }
 0x2f1   : > { %2267 = vst [vmem:[%s3952_s25 + $0x78] sm:$0xff] %v1973_v43  ;;  %v1926_v4 = vadd.f32 %v1925_v3, %v3942_v35  ;;  %v2072_v12 = vpop.f32.mrf.mxu0 }
 0x2f2   : > { %2268 = vst [vmem:[%s3952_s25 + $0x80] sm:$0xff] %v2022_v1  ;;  %v2073_v0 = vadd.f32 %v2072_v12, %v3945_v46 }
 0x2f3   : > { %2273 = vst [vmem:[%s3952_s25 + $0xa8] sm:$0xff] %v1926_v4 }
 0x2f4   : > { %2276 = vst [vmem:[%s3952_s25 + $0xc0] sm:$0xff] %v2073_v0 }
 0x2f6   : > { %v1974_v2 = vpop.f32.mrf.mxu2 }
 0x2f7   : > { %v1975_v56 = vadd.f32 %v1974_v2, %v3960_v19  ;;  %v2023_v22 = vpop.f32.mrf.mxu3 }
 0x2f8   : > { %v2024_v7 = vadd.f32 %v2023_v22, %v3965_v41  ;;  %v1928_v6 = vpop.f32.mrf.mxu1 }
 0x2f9   : > { %2274 = vst [vmem:[%s3952_s25 + $0xb0] sm:$0xff] %v1975_v56  ;;  %v1929_v10 = vadd.f32 %v1928_v6, %v3942_v35  ;;  %v2075_v62 = vpop.f32.mrf.mxu0 }
 0x2fa   : > { %2275 = vst [vmem:[%s3952_s25 + $0xb8] sm:$0xff] %v2024_v7  ;;  %v2076_v13 = vadd.f32 %v2075_v62, %v3945_v46 }
 0x2fb   : > { %2280 = vst [vmem:[%s3952_s25 + $0xe0] sm:$0xff] %v1929_v10  ;;  %2123 = vmatmul.bf16.gmra.mxu1 %v3818_v25  ;;  %2172 = vmatmul.bf16.gmra.mxu2 %v3818_v25 }
 0x2fc   : > { %2283 = vst [vmem:[%s3952_s25 + $0xf8] sm:$0xff] %v2076_v13  ;;  %2221 = vmatmul.bf16.gmra.mxu3 %v3818_v25 }
 0x2fe   : > { %v1977_v9 = vpop.f32.mrf.mxu2 }
 0x2ff   : > { %v1978_v15 = vadd.f32 %v1977_v9, %v3960_v19  ;;  %v2026_v16 = vpop.f32.mrf.mxu3 }
 0x300   : > { %v2027_v18 = vadd.f32 %v2026_v16, %v3965_v41  ;;  %v1930_v23 = vpop.f32.mrf.mxu1 }
 0x301   : > { %2281 = vst [vmem:[%s3952_s25 + $0xe8] sm:$0xff] %v1978_v15  ;;  %v1931_v5 = vadd.f32 %v1930_v23, %v3942_v35  ;;  %v2077_v11 = vpop.f32.mrf.mxu0 }
 0x302   : > { %2282 = vst [vmem:[%s3952_s25 + $0xf0] sm:$0xff] %v2027_v18  ;;  %v2078_v24 = vadd.f32 %v2077_v11, %v3945_v46 }
 0x303   : > { %2287 = vst [vmem:[%s3952_s25 + $0x118] sm:$0xff] %v1931_v5 }
 0x304   : > { %2290 = vst [vmem:[%s3952_s25 + $0x130] sm:$0xff] %v2078_v24 }
 0x306   : > { %v1979_v25 = vpop.f32.mrf.mxu2 }
 0x307   : > { %v1980_v26 = vadd.f32 %v1979_v25, %v3960_v19  ;;  %v2028_v27 = vpop.f32.mrf.mxu3 }
 0x308   : > { %v2029_v28 = vadd.f32 %v2028_v27, %v3965_v41  ;;  %v1933_v33 = vpop.f32.mrf.mxu1 }
 0x309   : > { %2288 = vst [vmem:[%s3952_s25 + $0x120] sm:$0xff] %v1980_v26  ;;  %v1934_v20 = vadd.f32 %v1933_v33, %v3942_v35  ;;  %v2080_v36 = vpop.f32.mrf.mxu0 }
 0x30a   : > { %2289 = vst [vmem:[%s3952_s25 + $0x128] sm:$0xff] %v2029_v28  ;;  %v2081_v37 = vadd.f32 %v2080_v36, %v3945_v46 }
 0x30b   : > { %2294 = vst [vmem:[%s3952_s25 + $0x150] sm:$0xff] %v1934_v20  ;;  %2128 = vmatmul.bf16.gmra.mxu1 %v3844_v31  ;;  %2177 = vmatmul.bf16.gmra.mxu2 %v3844_v31 }
 0x30c   : > { %2297 = vst [vmem:[%s3952_s25 + $0x168] sm:$0xff] %v2081_v37  ;;  %2226 = vmatmul.bf16.gmra.mxu3 %v3844_v31 }
 0x30e   : > { %v1982_v14 = vpop.f32.mrf.mxu2 }
 0x30f   : > { %v1983_v17 = vadd.f32 %v1982_v14, %v3960_v19  ;;  %v2031_v34 = vpop.f32.mrf.mxu3 }
 0x310   : > { %v2032_v30 = vadd.f32 %v2031_v34, %v3965_v41  ;;  %v1935_v39 = vpop.f32.mrf.mxu1 }
 0x311   : > { %2295 = vst [vmem:[%s3952_s25 + $0x158] sm:$0xff] %v1983_v17  ;;  %v1936_v40 = vadd.f32 %v1935_v39, %v3942_v35  ;;  %v2082_v42 = vpop.f32.mrf.mxu0 }
 0x312   : > { %2296 = vst [vmem:[%s3952_s25 + $0x160] sm:$0xff] %v2032_v30  ;;  %v2083_v48 = vadd.f32 %v2082_v42, %v3945_v46 }
 0x313   : > { %2301 = vst [vmem:[%s3952_s25 + $0x188] sm:$0xff] %v1936_v40 }
 0x314   : > { %2304 = vst [vmem:[%s3952_s25 + $0x1a0] sm:$0xff] %v2083_v48 }
 0x316   : > { %v1984_v31 = vpop.f32.mrf.mxu2 }
 0x317   : > { %v1985_v47 = vadd.f32 %v1984_v31, %v3960_v19  ;;  %v2033_v49 = vpop.f32.mrf.mxu3 }
 0x318   : > { %v2034_v50 = vadd.f32 %v2033_v49, %v3965_v41  ;;  %v1938_v44 = vpop.f32.mrf.mxu1 }
 0x319   : > { %2302 = vst [vmem:[%s3952_s25 + $0x190] sm:$0xff] %v1985_v47  ;;  %v1939_v51 = vadd.f32 %v1938_v44, %v3942_v35  ;;  %v2085_v57 = vpop.f32.mrf.mxu0 }
 0x31a   : > { %2303 = vst [vmem:[%s3952_s25 + $0x198] sm:$0xff] %v2034_v50  ;;  %v2086_v54 = vadd.f32 %v2085_v57, %v3945_v46 }
 0x31b   : > { %2308 = vst [vmem:[%s3952_s25 + $0x1c0] sm:$0xff] %v1939_v51  ;;  %2133 = vmatmul.bf16.gmra.mxu1 %v3870_v45  ;;  %2182 = vmatmul.bf16.gmra.mxu2 %v3870_v45 }
 0x31c   : > { %2311 = vst [vmem:[%s3952_s25 + $0x1d8] sm:$0xff] %v2086_v54  ;;  %2231 = vmatmul.bf16.gmra.mxu3 %v3870_v45 }
 0x31e   : > { %v1987_v38 = vpop.f32.mrf.mxu2 }
 0x31f   : > { %v1988_v52 = vadd.f32 %v1987_v38, %v3960_v19  ;;  %v2036_v53 = vpop.f32.mrf.mxu3 }
 0x320   : > { %v2037_v58 = vadd.f32 %v2036_v53, %v3965_v41  ;;  %v1940_v59 = vpop.f32.mrf.mxu1 }
 0x321   : > { %2309 = vst [vmem:[%s3952_s25 + $0x1c8] sm:$0xff] %v1988_v52  ;;  %v1941_v60 = vadd.f32 %v1940_v59, %v3942_v35  ;;  %v2087_v55 = vpop.f32.mrf.mxu0 }
 0x322   : > { %2310 = vst [vmem:[%s3952_s25 + $0x1d0] sm:$0xff] %v2037_v58  ;;  %v2088_v63 = vadd.f32 %v2087_v55, %v3945_v46  ;;  %v4121_v58 = vperm.slane %v3939_v29, 6 }
 0x323   : > { %2315 = vst [vmem:[%s3952_s25 + $0x1f8] sm:$0xff] %v1941_v60 }
 0x324   : > { %2318 = vst [vmem:[%s3952_s25 + $0x210] sm:$0xff] %v2088_v63 }
 0x326   : > { %v1989_v45 = vpop.f32.mrf.mxu2 }
 0x327   : > { %v1990_v43 = vadd.f32 %v1989_v45, %v3960_v19  ;;  %v2038_v61 = vpop.f32.mrf.mxu3 }
 0x328   : > { %v2039_v1 = vadd.f32 %v2038_v61, %v3965_v41  ;;  %v1943_v3 = vpop.f32.mrf.mxu1 }
 0x329   : > { %2316 = vst [vmem:[%s3952_s25 + $0x200] sm:$0xff] %v1990_v43  ;;  %v1944_v4 = vadd.f32 %v1943_v3, %v3942_v35  ;;  %v2090_v12 = vpop.f32.mrf.mxu0 }
 0x32a   : > { %2317 = vst [vmem:[%s3952_s25 + $0x208] sm:$0xff] %v2039_v1  ;;  %v2091_v0 = vadd.f32 %v2090_v12, %v3945_v46 }
 0x32b   : > { %2322 = vst [vmem:[%s3952_s25 + $0x230] sm:$0xff] %v1944_v4  ;;  %2138 = vmatmul.bf16.gmra.mxu1 %v3896_v8  ;;  %2187 = vmatmul.bf16.gmra.mxu2 %v3896_v8 }
 0x32c   : > { %2325 = vst [vmem:[%s3952_s25 + $0x248] sm:$0xff] %v2091_v0  ;;  %2236 = vmatmul.bf16.gmra.mxu3 %v3896_v8 }
 0x32e   : > { %v1992_v2 = vpop.f32.mrf.mxu2 }
 0x32f   : > { %v1993_v56 = vadd.f32 %v1992_v2, %v3960_v19  ;;  %v2041_v22 = vpop.f32.mrf.mxu3 }
 0x330   : > { %v2042_v7 = vadd.f32 %v2041_v22, %v3965_v41  ;;  %v1945_v6 = vpop.f32.mrf.mxu1 }
 0x331   : > { %2323 = vst [vmem:[%s3952_s25 + $0x238] sm:$0xff] %v1993_v56  ;;  %v1946_v10 = vadd.f32 %v1945_v6, %v3942_v35  ;;  %v2092_v62 = vpop.f32.mrf.mxu0 }
 0x332   : > { %2324 = vst [vmem:[%s3952_s25 + $0x240] sm:$0xff] %v2042_v7  ;;  %v2093_v13 = vadd.f32 %v2092_v62, %v3945_v46 }
 0x333   : > { %2329 = vst [vmem:[%s3952_s25 + $0x268] sm:$0xff] %v1946_v10 }
 0x334   : > { %2332 = vst [vmem:[%s3952_s25 + $0x280] sm:$0xff] %v2093_v13 }
 0x336   : > { %v1994_v8 = vpop.f32.mrf.mxu2 }
 0x337   : > { %v1995_v9 = vadd.f32 %v1994_v8, %v3960_v19  ;;  %v2043_v15 = vpop.f32.mrf.mxu3 }
 0x338   : > { %v2044_v16 = vadd.f32 %v2043_v15, %v3965_v41  ;;  %v1948_v18 = vpop.f32.mrf.mxu1 }
 0x339   : > { %2330 = vst [vmem:[%s3952_s25 + $0x270] sm:$0xff] %v1995_v9  ;;  %v1949_v23 = vadd.f32 %v1948_v18, %v3942_v35  ;;  %v2095_v5 = vpop.f32.mrf.mxu0 }
 0x33a   : > { %2331 = vst [vmem:[%s3952_s25 + $0x278] sm:$0xff] %v2044_v16  ;;  %v2096_v11 = vadd.f32 %v2095_v5, %v3945_v46 }
 0x33b   : > { %2336 = vst [vmem:[%s3952_s25 + $0x2a0] sm:$0xff] %v1949_v23  ;;  %2143 = vmatmul.bf16.gmra.mxu1 %v3922_v32  ;;  %2192 = vmatmul.bf16.gmra.mxu2 %v3922_v32 }
 0x33c   : > { %2339 = vst [vmem:[%s3952_s25 + $0x2b8] sm:$0xff] %v2096_v11  ;;  %2241 = vmatmul.bf16.gmra.mxu3 %v3922_v32 }
 0x33e   : > { %v1997_v24 = vpop.f32.mrf.mxu2 }
 0x33f   : > { %v1998_v25 = vadd.f32 %v1997_v24, %v3960_v19  ;;  %v2046_v26 = vpop.f32.mrf.mxu3 }
 0x340   : > { %v2047_v27 = vadd.f32 %v2046_v26, %v3965_v41  ;;  %v1950_v28 = vpop.f32.mrf.mxu1 }
 0x341   : > { %2337 = vst [vmem:[%s3952_s25 + $0x2a8] sm:$0xff] %v1998_v25  ;;  %v1951_v33 = vadd.f32 %v1950_v28, %v3942_v35  ;;  %v2097_v20 = vpop.f32.mrf.mxu0 }
 0x342   : > { %2338 = vst [vmem:[%s3952_s25 + $0x2b0] sm:$0xff] %v2047_v27  ;;  %v2098_v36 = vadd.f32 %v2097_v20, %v3945_v46 }
 0x343   : > { %2343 = vst [vmem:[%s3952_s25 + $0x2d8] sm:$0xff] %v1951_v33 }
 0x344   : > { %2346 = vst [vmem:[%s3952_s25 + $0x2f0] sm:$0xff] %v2098_v36 }
 0x346   : > { %v1999_v32 = vpop.f32.mrf.mxu2 }
 0x347   : > { %v2000_v37 = vadd.f32 %v1999_v32, %v3960_v19  ;;  %v2048_v14 = vpop.f32.mrf.mxu3 }
 0x348   : > { %v2049_v17 = vadd.f32 %v2048_v14, %v3965_v41  ;;  %v1953_v34 = vpop.f32.mrf.mxu1 }
 0x349   : > { %2344 = vst [vmem:[%s3952_s25 + $0x2e0] sm:$0xff] %v2000_v37  ;;  %v1954_v30 = vadd.f32 %v1953_v34, %v3942_v35  ;;  %v2100_v39 = vpop.f32.mrf.mxu0 }
 0x34a   : > { %2345 = vst [vmem:[%s3952_s25 + $0x2e8] sm:$0xff] %v2049_v17  ;;  %v2101_v40 = vadd.f32 %v2100_v39, %v3945_v46 }
 0x34b   : > { %2350 = vst [vmem:[%s3952_s25 + $0x310] sm:$0xff] %v1954_v30  ;;  %2148 = vmatmul.bf16.gmra.mxu1 %v3930_v21  ;;  %2197 = vmatmul.bf16.gmra.mxu2 %v3930_v21 }
 0x34c   : > { %2353 = vst [vmem:[%s3952_s25 + $0x328] sm:$0xff] %v2101_v40  ;;  %2246 = vmatmul.bf16.gmra.mxu3 %v3930_v21  ;;  %v4109_v21 = vperm.slane %v3939_v29, 4 }
 0x34e   : > { %v2002_v42 = vpop.f32.mrf.mxu2 }
 0x34f   : > { %v2003_v48 = vadd.f32 %v2002_v42, %v3960_v19  ;;  %v2051_v31 = vpop.f32.mrf.mxu3 }
 0x350   : > { %v2052_v47 = vadd.f32 %v2051_v31, %v3965_v41  ;;  %v1955_v49 = vpop.f32.mrf.mxu1 }
 0x351   : > { %2351 = vst [vmem:[%s3952_s25 + $0x318] sm:$0xff] %v2003_v48  ;;  %v1956_v50 = vadd.f32 %v1955_v49, %v3942_v35  ;;  %v2102_v44 = vpop.f32.mrf.mxu0 }
 0x352   : > { %2352 = vst [vmem:[%s3952_s25 + $0x320] sm:$0xff] %v2052_v47  ;;  %v2103_v51 = vadd.f32 %v2102_v44, %v3945_v46  ;;  %v4118_v46 = vperm.slane %v3939_v29, 5 }
 0x353   : > { %2357 = vst [vmem:[%s3952_s25 + $0x348] sm:$0xff] %v1956_v50 }
 0x354   : > { %2360 = vst [vmem:[%s3952_s25 + $0x360] sm:$0xff] %v2103_v51 }
 0x356   : > { %v2004_v57 = vpop.f32.mrf.mxu2 }
 0x357   : > { %v2005_v54 = vadd.f32 %v2004_v57, %v3960_v19  ;;  %v2053_v38 = vpop.f32.mrf.mxu3 }
 0x358   : > { %v2054_v52 = vadd.f32 %v2053_v38, %v3965_v41  ;;  %v2114_v53 = vpop.f32.mrf.mxu1 }
 0x359   : > { %2358 = vst [vmem:[%s3952_s25 + $0x350] sm:$0xff] %v2005_v54  ;;  %v2115_v35 = vadd.f32 %v2114_v53, %v4109_v21 }
 0x35a   : > { %2359 = vst [vmem:[%s3952_s25 + $0x358] sm:$0xff] %v2054_v52 }
 0x35b   : > { %2256 = vst [vmem:[%s3952_s25 + $0x20] sm:$0xff] %v2115_v35 }
 0x35e   : > { %v2163_v59 = vpop.f32.mrf.mxu2 }
 0x35f   : > { %v2164_v19 = vadd.f32 %v2163_v59, %v4118_v46  ;;  %v2212_v41 = vpop.f32.mrf.mxu3 }
 0x360   : > { %v2213_v60 = vadd.f32 %v2212_v41, %v4121_v58  ;;  %v2116_v55 = vpop.f32.mrf.mxu1 }
 0x361   : > { %2257 = vst [vmem:[%s3952_s25 + $0x28] sm:$0xff] %v2164_v19  ;;  %v2117_v63 = vadd.f32 %v2116_v55, %v4109_v21 }
 0x362   : > { %2258 = vst.msk [vmem:[%s3952_s25 + $0x30] sm:$0xff] %vm906_vm0, %v2213_v60 }
 0x363   : > { %2263 = vst [vmem:[%s3952_s25 + $0x58] sm:$0xff] %v2117_v63 }
 0x366   : > { %v2165_v45 = vpop.f32.mrf.mxu2 }
 0x367   : > { %v2166_v29 = vadd.f32 %v2165_v45, %v4118_v46  ;;  %v2214_v43 = vpop.f32.mrf.mxu3 }
 0x368   : > { %v2215_v61 = vadd.f32 %v2214_v43, %v4121_v58  ;;  %v2119_v1 = vpop.f32.mrf.mxu1 }
 0x369   : > { %2264 = vst [vmem:[%s3952_s25 + $0x60] sm:$0xff] %v2166_v29  ;;  %v2120_v3 = vadd.f32 %v2119_v1, %v4109_v21 }
 0x36a   : > { %2265 = vst.msk [vmem:[%s3952_s25 + $0x68] sm:$0xff] %vm906_vm0, %v2215_v61 }
 0x36b   : > { %2270 = vst [vmem:[%s3952_s25 + $0x90] sm:$0xff] %v2120_v3 }
 0x36e   : > { %v2168_v4 = vpop.f32.mrf.mxu2 }
 0x36f   : > { %v2169_v12 = vadd.f32 %v2168_v4, %v4118_v46  ;;  %v2217_v0 = vpop.f32.mrf.mxu3 }
 0x370   : > { %v2218_v2 = vadd.f32 %v2217_v0, %v4121_v58  ;;  %v2121_v56 = vpop.f32.mrf.mxu1 }
 0x371   : > { %2271 = vst [vmem:[%s3952_s25 + $0x98] sm:$0xff] %v2169_v12  ;;  %v2122_v22 = vadd.f32 %v2121_v56, %v4109_v21 }
 0x372   : > { %2272 = vst.msk [vmem:[%s3952_s25 + $0xa0] sm:$0xff] %vm906_vm0, %v2218_v2 }
 0x373   : > { %2277 = vst [vmem:[%s3952_s25 + $0xc8] sm:$0xff] %v2122_v22 }
 0x376   : > { %v2170_v7 = vpop.f32.mrf.mxu2 }
 0x377   : > { %v2171_v6 = vadd.f32 %v2170_v7, %v4118_v46  ;;  %v2219_v10 = vpop.f32.mrf.mxu3 }
 0x378   : > { %v2220_v62 = vadd.f32 %v2219_v10, %v4121_v58  ;;  %v2124_v13 = vpop.f32.mrf.mxu1 }
 0x379   : > { %2278 = vst [vmem:[%s3952_s25 + $0xd0] sm:$0xff] %v2171_v6  ;;  %v2125_v8 = vadd.f32 %v2124_v13, %v4109_v21 }
 0x37a   : > { %2279 = vst.msk [vmem:[%s3952_s25 + $0xd8] sm:$0xff] %vm906_vm0, %v2220_v62 }
 0x37b   : > { %2284 = vst [vmem:[%s3952_s25 + $0x100] sm:$0xff] %v2125_v8 }
 0x37e   : > { %v2173_v9 = vpop.f32.mrf.mxu2 }
 0x37f   : > { %v2174_v15 = vadd.f32 %v2173_v9, %v4118_v46  ;;  %v2222_v16 = vpop.f32.mrf.mxu3 }
 0x380   : > { %v2223_v18 = vadd.f32 %v2222_v16, %v4121_v58  ;;  %v2126_v23 = vpop.f32.mrf.mxu1 }
 0x381   : > { %2285 = vst [vmem:[%s3952_s25 + $0x108] sm:$0xff] %v2174_v15  ;;  %v2127_v5 = vadd.f32 %v2126_v23, %v4109_v21 }
 0x382   : > { %2286 = vst.msk [vmem:[%s3952_s25 + $0x110] sm:$0xff] %vm906_vm0, %v2223_v18 }
 0x383   : > { %2291 = vst [vmem:[%s3952_s25 + $0x138] sm:$0xff] %v2127_v5 }
 0x386   : > { %v2175_v11 = vpop.f32.mrf.mxu2 }
 0x387   : > { %v2176_v24 = vadd.f32 %v2175_v11, %v4118_v46  ;;  %v2224_v25 = vpop.f32.mrf.mxu3 }
 0x388   : > { %v2225_v26 = vadd.f32 %v2224_v25, %v4121_v58  ;;  %v2129_v27 = vpop.f32.mrf.mxu1 }
 0x389   : > { %2292 = vst [vmem:[%s3952_s25 + $0x140] sm:$0xff] %v2176_v24  ;;  %v2130_v28 = vadd.f32 %v2129_v27, %v4109_v21 }
 0x38a   : > { %2293 = vst.msk [vmem:[%s3952_s25 + $0x148] sm:$0xff] %vm906_vm0, %v2225_v26 }
 0x38b   : > { %2298 = vst [vmem:[%s3952_s25 + $0x170] sm:$0xff] %v2130_v28 }
 0x38e   : > { %v2178_v33 = vpop.f32.mrf.mxu2 }
 0x38f   : > { %v2179_v20 = vadd.f32 %v2178_v33, %v4118_v46  ;;  %v2227_v36 = vpop.f32.mrf.mxu3 }
 0x390   : > { %v2228_v32 = vadd.f32 %v2227_v36, %v4121_v58  ;;  %v2131_v37 = vpop.f32.mrf.mxu1 }
 0x391   : > { %2299 = vst [vmem:[%s3952_s25 + $0x178] sm:$0xff] %v2179_v20  ;;  %v2132_v14 = vadd.f32 %v2131_v37, %v4109_v21 }
 0x392   : > { %2300 = vst.msk [vmem:[%s3952_s25 + $0x180] sm:$0xff] %vm906_vm0, %v2228_v32 }
 0x393   : > { %2305 = vst [vmem:[%s3952_s25 + $0x1a8] sm:$0xff] %v2132_v14 }
 0x396   : > { %v2180_v17 = vpop.f32.mrf.mxu2 }
 0x397   : > { %v2181_v34 = vadd.f32 %v2180_v17, %v4118_v46  ;;  %v2229_v30 = vpop.f32.mrf.mxu3 }
 0x398   : > { %v2230_v39 = vadd.f32 %v2229_v30, %v4121_v58  ;;  %v2134_v40 = vpop.f32.mrf.mxu1 }
 0x399   : > { %2306 = vst [vmem:[%s3952_s25 + $0x1b0] sm:$0xff] %v2181_v34  ;;  %v2135_v42 = vadd.f32 %v2134_v40, %v4109_v21 }
 0x39a   : > { %2307 = vst.msk [vmem:[%s3952_s25 + $0x1b8] sm:$0xff] %vm906_vm0, %v2230_v39 }
 0x39b   : > { %2312 = vst [vmem:[%s3952_s25 + $0x1e0] sm:$0xff] %v2135_v42 }
 0x39e   : > { %v2183_v48 = vpop.f32.mrf.mxu2 }
 0x39f   : > { %v2184_v31 = vadd.f32 %v2183_v48, %v4118_v46  ;;  %v2232_v47 = vpop.f32.mrf.mxu3 }
 0x3a0   : > { %v2233_v49 = vadd.f32 %v2232_v47, %v4121_v58  ;;  %v2136_v50 = vpop.f32.mrf.mxu1 }
 0x3a1   : > { %2313 = vst [vmem:[%s3952_s25 + $0x1e8] sm:$0xff] %v2184_v31  ;;  %v2137_v44 = vadd.f32 %v2136_v50, %v4109_v21 }
 0x3a2   : > { %2314 = vst.msk [vmem:[%s3952_s25 + $0x1f0] sm:$0xff] %vm906_vm0, %v2233_v49 }
 0x3a3   : > { %2319 = vst [vmem:[%s3952_s25 + $0x218] sm:$0xff] %v2137_v44 }
 0x3a6   : > { %v2185_v51 = vpop.f32.mrf.mxu2 }
 0x3a7   : > { %v2186_v57 = vadd.f32 %v2185_v51, %v4118_v46  ;;  %v2234_v54 = vpop.f32.mrf.mxu3 }
 0x3a8   : > { %v2235_v38 = vadd.f32 %v2234_v54, %v4121_v58  ;;  %v2139_v52 = vpop.f32.mrf.mxu1 }
 0x3a9   : > { %2320 = vst [vmem:[%s3952_s25 + $0x220] sm:$0xff] %v2186_v57  ;;  %v2140_v53 = vadd.f32 %v2139_v52, %v4109_v21 }
 0x3aa   : > { %2321 = vst.msk [vmem:[%s3952_s25 + $0x228] sm:$0xff] %vm906_vm0, %v2235_v38 }
 0x3ab   : > { %2326 = vst [vmem:[%s3952_s25 + $0x250] sm:$0xff] %v2140_v53 }
 0x3ae   : > { %v2188_v35 = vpop.f32.mrf.mxu2 }
 0x3af   : > { %v2189_v59 = vadd.f32 %v2188_v35, %v4118_v46  ;;  %v2237_v19 = vpop.f32.mrf.mxu3 }
 0x3b0   : > { %v2238_v41 = vadd.f32 %v2237_v19, %v4121_v58  ;;  %v2141_v60 = vpop.f32.mrf.mxu1 }
 0x3b1   : > { %2327 = vst [vmem:[%s3952_s25 + $0x258] sm:$0xff] %v2189_v59  ;;  %v2142_v55 = vadd.f32 %v2141_v60, %v4109_v21 }
 0x3b2   : > { %2328 = vst.msk [vmem:[%s3952_s25 + $0x260] sm:$0xff] %vm906_vm0, %v2238_v41 }
 0x3b3   : > { %2333 = vst [vmem:[%s3952_s25 + $0x288] sm:$0xff] %v2142_v55 }
 0x3b6   : > { %v2190_v63 = vpop.f32.mrf.mxu2 }
 0x3b7   : > { %v2191_v45 = vadd.f32 %v2190_v63, %v4118_v46  ;;  %v2239_v29 = vpop.f32.mrf.mxu3 }
 0x3b8   : > { %v2240_v43 = vadd.f32 %v2239_v29, %v4121_v58  ;;  %v2144_v61 = vpop.f32.mrf.mxu1 }
 0x3b9   : > { %2334 = vst [vmem:[%s3952_s25 + $0x290] sm:$0xff] %v2191_v45  ;;  %v2145_v1 = vadd.f32 %v2144_v61, %v4109_v21 }
 0x3ba   : > { %2335 = vst.msk [vmem:[%s3952_s25 + $0x298] sm:$0xff] %vm906_vm0, %v2240_v43 }
 0x3bb   : > { %2340 = vst [vmem:[%s3952_s25 + $0x2c0] sm:$0xff] %v2145_v1 }
 0x3be   : > { %v2193_v3 = vpop.f32.mrf.mxu2 }
 0x3bf   : > { %v2194_v4 = vadd.f32 %v2193_v3, %v4118_v46  ;;  %v2242_v12 = vpop.f32.mrf.mxu3 }
 0x3c0   : > { %v2243_v0 = vadd.f32 %v2242_v12, %v4121_v58  ;;  %v2146_v2 = vpop.f32.mrf.mxu1 }
 0x3c1   : > { %2341 = vst [vmem:[%s3952_s25 + $0x2c8] sm:$0xff] %v2194_v4  ;;  %v2147_v56 = vadd.f32 %v2146_v2, %v4109_v21 }
 0x3c2   : > { %2342 = vst.msk [vmem:[%s3952_s25 + $0x2d0] sm:$0xff] %vm906_vm0, %v2243_v0 }
 0x3c3   : > { %2347 = vst [vmem:[%s3952_s25 + $0x2f8] sm:$0xff] %v2147_v56 }
 0x3c6   : > { %v2195_v22 = vpop.f32.mrf.mxu2 }
 0x3c7   : > { %v2196_v7 = vadd.f32 %v2195_v22, %v4118_v46  ;;  %v2244_v6 = vpop.f32.mrf.mxu3 }
 0x3c8   : > { %v2245_v10 = vadd.f32 %v2244_v6, %v4121_v58  ;;  %v2149_v62 = vpop.f32.mrf.mxu1 }
 0x3c9   : > { %2348 = vst [vmem:[%s3952_s25 + $0x300] sm:$0xff] %v2196_v7  ;;  %v2150_v13 = vadd.f32 %v2149_v62, %v4109_v21 }
 0x3ca   : > { %2349 = vst.msk [vmem:[%s3952_s25 + $0x308] sm:$0xff] %vm906_vm0, %v2245_v10 }
 0x3cb   : > { %2354 = vst [vmem:[%s3952_s25 + $0x330] sm:$0xff] %v2150_v13 }
 0x3ce   : > { %v2198_v8 = vpop.f32.mrf.mxu2 }
 0x3cf   : > { %v2199_v9 = vadd.f32 %v2198_v8, %v4118_v46  ;;  %v2247_v15 = vpop.f32.mrf.mxu3 }
 0x3d0   : > { %v2248_v16 = vadd.f32 %v2247_v15, %v4121_v58  ;;  %v2151_v18 = vpop.f32.mrf.mxu1 }
 0x3d1   : > { %2355 = vst [vmem:[%s3952_s25 + $0x338] sm:$0xff] %v2199_v9  ;;  %v2152_v23 = vadd.f32 %v2151_v18, %v4109_v21 }
 0x3d2   : > { %2356 = vst.msk [vmem:[%s3952_s25 + $0x340] sm:$0xff] %vm906_vm0, %v2248_v16 }
 0x3d3   : > { %2361 = vst [vmem:[%s3952_s25 + $0x368] sm:$0xff] %v2152_v23 }
 0x3d6   : > { %v2200_v5 = vpop.f32.mrf.mxu2 }
 0x3d7   : > { %v2201_v11 = vadd.f32 %v2200_v5, %v4118_v46  ;;  %v2249_v24 = vpop.f32.mrf.mxu3 }
 0x3d8   : > { %v2250_v25 = vadd.f32 %v2249_v24, %v4121_v58 }
 0x3d9   : > { %2362 = vst [vmem:[%s3952_s25 + $0x370] sm:$0xff] %v2201_v11 }
 0x3da   : > { %2363 = vst.msk [vmem:[%s3952_s25 + $0x378] sm:$0xff] %vm906_vm0, %v2250_v25 }
 0x3db PF: > { %s19_s30 = sadd.s32 1, %s3042_s30  }
 0x3dc   : > { %p16_p4 = scmp.ge.s32.totalorder %s19_s30, 4  }
 0x3de   :  { %18 = sbr.rel (!%p16_p4) target bundleno = 1 (0x1), region = 86 }

</bundles_post_ra>
